<compile_context>
chip_gen: v5e
topology: v5e:2x2
jax: 0.10.0
libtpu: 0.0.40
codegen_flags: <defaults>
</compile_context>

<pallas_src>
import functools

import jax
import jax.numpy as jnp
from jax.experimental import pallas as pl
from jax.experimental.pallas import tpu as pltpu

LANE = 128      # pad H to a multiple of the lane width
SUBLANE = 8     # pad B to a multiple of the sublane width


def _round_up(x, m):
    return (x + m - 1) // m * m


def _lstm_rec_kernel(gx_ref, whh_ref, *refs, hidden, t_chunk, t_total, t_real,
                     emit_hseq):
    """Recurrent part of one LSTM layer.

    grid = (B_blocks, T_chunks): batch axis is independent ("parallel"),
    time axis is the sequential recurrence ("arbitrary").

      gx_ref  : (t_chunk, B_BLK, 4H)  precomputed x @ W_ih + b for this chunk
      whh_ref : (H, 4H)               recurrent weights (transposed)
      refs    : [hseq_ref]?, pool_ref, h_sc, c_sc
    """
    if emit_hseq:
        hseq_ref, pool_ref, h_sc, c_sc = refs
    else:
        pool_ref, h_sc, c_sc = refs
        hseq_ref = None

    tci = pl.program_id(1)          # time-chunk index (innermost grid axis)

    @pl.when(tci == 0)
    def _():
        h_sc[...] = jnp.zeros_like(h_sc)
        c_sc[...] = jnp.zeros_like(c_sc)
        pool_ref[...] = jnp.full(pool_ref.shape, -jnp.inf, pool_ref.dtype)

    H = hidden

    def step(i, carry):
        h_prev, c_prev, pool = carry
        # Only the recurrent matmul remains on the serial chain.
        gates = gx_ref[i] + jnp.dot(h_prev, whh_ref[...],
                                    preferred_element_type=jnp.float32)
        # H is a multiple of 128 -> lane-aligned, free slices.
        i_g = jax.nn.sigmoid(gates[:, 0 * H:1 * H])
        f_g = jax.nn.sigmoid(gates[:, 1 * H:2 * H])
        g_g = jnp.tanh(gates[:, 2 * H:3 * H])
        o_g = jax.nn.sigmoid(gates[:, 3 * H:4 * H])
        c_new = f_g * c_prev + i_g * g_g
        h_new = o_g * jnp.tanh(c_new)
        if emit_hseq:
            hseq_ref[i] = h_new.astype(hseq_ref.dtype)
        if t_total == t_real:
            pool = jnp.maximum(pool, h_new)
        else:
            # Ragged T: keep padded timesteps out of the running max.
            valid = (tci * t_chunk + i) < t_real
            pool = jnp.where(valid, jnp.maximum(pool, h_new), pool)
        return h_new, c_new, pool

    h, c, pool = jax.lax.fori_loop(
        0, t_chunk, step, (h_sc[...], c_sc[...], pool_ref[...]), unroll=True)
    h_sc[...] = h
    c_sc[...] = c
    pool_ref[...] = pool


def lstm_layer_pallas(gates_x, w_hh_t, *, t_real, emit_hseq,
                      t_chunk=8, b_blk=SUBLANE):
    """gates_x: (Tp, Bp, 4H) precomputed input projection (time-major, padded).

    Returns (h_seq or None, pooled_running_max (Bp, H))."""
    Tp, Bp, G = gates_x.shape
    H = w_hh_t.shape[0]
    assert G == 4 * H and w_hh_t.shape == (H, 4 * H)
    assert Tp % t_chunk == 0 and Bp % b_blk == 0
    n_b, n_t = Bp // b_blk, Tp // t_chunk

    kernel = functools.partial(_lstm_rec_kernel, hidden=H, t_chunk=t_chunk,
                               t_total=Tp, t_real=t_real, emit_hseq=emit_hseq)

    out_shape = []
    out_specs = []
    if emit_hseq:
        out_shape.append(jax.ShapeDtypeStruct((Tp, Bp, H), jnp.float32))
        out_specs.append(pl.BlockSpec((t_chunk, b_blk, H),
                                      lambda b, t: (t, b, 0)))
    out_shape.append(jax.ShapeDtypeStruct((Bp, H), jnp.float32))
    out_specs.append(pl.BlockSpec((b_blk, H), lambda b, t: (b, 0)))

    outs = pl.pallas_call(
        kernel,
        out_shape=tuple(out_shape),
        grid_spec=pltpu.PrefetchScalarGridSpec(
            num_scalar_prefetch=0,
            grid=(n_b, n_t),
            in_specs=[
                pl.BlockSpec((t_chunk, b_blk, 4 * H), lambda b, t: (t, b, 0)),
                pl.BlockSpec((H, 4 * H), lambda b, t: (0, 0)),   # constant
            ],
            out_specs=tuple(out_specs),
            scratch_shapes=[
                pltpu.VMEM((b_blk, H), jnp.float32),   # h carry
                pltpu.VMEM((b_blk, H), jnp.float32),   # c carry
            ],
        ),
        compiler_params=pltpu.CompilerParams(
            dimension_semantics=("parallel", "arbitrary"),
            vmem_limit_bytes=32 * 1024 * 1024,
        ),
    )(gates_x, w_hh_t)

    if emit_hseq:
        h_seq, pooled = outs
        return h_seq, pooled
    pooled = outs[0] if isinstance(outs, (tuple, list)) else outs
    return None, pooled


def _pad_gate_cols(w, H, Hp):
    """Pad each of the 4 gate blocks in the last dim from H to Hp with zeros."""
    if Hp == H:
        return w
    lead = w.shape[:-1]
    w4 = w.reshape(lead + (4, H))
    w4 = jnp.pad(w4, [(0, 0)] * (len(lead) + 1) + [(0, Hp - H)])
    return w4.reshape(lead + (4 * Hp,))


def _pad_layer(layer, d_in_pad, Hp):
    """Zero-pad one layer's weights to (d_in_pad, 4Hp)/(Hp, 4Hp)/(1, 4Hp)."""
    H = layer["w_hh_t"].shape[0]
    d_in = layer["w_ih_t"].shape[0]
    w_ih = _pad_gate_cols(layer["w_ih_t"], H, Hp)
    w_ih = jnp.pad(w_ih, ((0, d_in_pad - d_in), (0, 0)))
    w_hh = _pad_gate_cols(layer["w_hh_t"], H, Hp)
    w_hh = jnp.pad(w_hh, ((0, Hp - H), (0, 0)))
    b = _pad_gate_cols(layer["b"], H, Hp)
    return w_ih, w_hh, b


def gru_attn_forward(x_btd, params, *, t_chunk=8, b_blk=SUBLANE):
    """x_btd: (B, T, glove_dim) -> (B, enc_hid) time-max of top LSTM layer."""
    B, T, _ = x_btd.shape
    H = params[0]["w_hh_t"].shape[0]
    Hp = _round_up(H, LANE)
    Bp = _round_up(B, b_blk)
    Tp = _round_up(T, t_chunk)

    x = jnp.transpose(x_btd, (1, 0, 2))                # time-major (T, B, D)
    x = jnp.pad(x, ((0, 0), (0, Bp - B), (0, 0)))      # (T, Bp, D)

    pooled = None
    for li, layer in enumerate(params):
        d_in = x.shape[-1]
        w_ih, w_hh, b = _pad_layer(layer, d_in, Hp)
        # Hoisted input projection: one big (T*B, Din) @ (Din, 4H) matmul,
        # bias folded in (removes it from the per-step VPU work).
        Tx = x.shape[0]
        gx = jnp.dot(x.reshape(Tx * Bp, d_in), w_ih,
                     precision=jax.lax.Precision.HIGHEST) + b
        gx = gx.reshape(Tx, Bp, 4 * Hp)
        if Tx < Tp:
            gx = jnp.pad(gx, ((0, Tp - Tx), (0, 0), (0, 0)))
        last = li == len(params) - 1
        h_seq, pooled = lstm_layer_pallas(
            gx, w_hh, t_real=T, emit_hseq=not last,
            t_chunk=t_chunk, b_blk=b_blk)
        x = h_seq   # (Tp, Bp, Hp); padded lanes stay 0, padded rows/steps masked
    return pooled[:B, :H]


def init_params(key, glove_dim, enc_hid, rnn_layers):
    """Deterministic init matching PyTorch LSTM shapes (uniform +-1/sqrt(H))."""
    params = []
    bound = 1.0 / jnp.sqrt(jnp.float32(enc_hid))
    d_in = glove_dim
    for _ in range(rnn_layers):
        key, k1, k2, k3, k4 = jax.random.split(key, 5)
        w_ih = jax.random.uniform(k1, (4 * enc_hid, d_in), jnp.float32,
                                  -bound, bound)
        w_hh = jax.random.uniform(k2, (4 * enc_hid, enc_hid), jnp.float32,
                                  -bound, bound)
        b_ih = jax.random.uniform(k3, (4 * enc_hid,), jnp.float32, -bound, bound)
        b_hh = jax.random.uniform(k4, (4 * enc_hid,), jnp.float32, -bound, bound)
        params.append({
            "w_ih_t": w_ih.T,                         # (D_in, 4H)
            "w_hh_t": w_hh.T,                         # (H, 4H)
            "b": (b_ih + b_hh).reshape(1, 4 * enc_hid),
        })
        d_in = enc_hid
    return params


def gru_attn_reference(x_btd, params):
    """Pure-JAX reference (lax.scan LSTM + max over time), unpadded math."""
    x = jnp.transpose(x_btd, (1, 0, 2))
    for layer in params:
        H = layer["w_hh_t"].shape[0]
        B = x.shape[1]

        def step(carry, x_t, layer=layer, H=H):
            h, c = carry
            g = x_t @ layer["w_ih_t"] + h @ layer["w_hh_t"] + layer["b"]
            i = jax.nn.sigmoid(g[:, 0:H])
            f = jax.nn.sigmoid(g[:, H:2 * H])
            gg = jnp.tanh(g[:, 2 * H:3 * H])
            o = jax.nn.sigmoid(g[:, 3 * H:4 * H])
            c = f * c + i * gg
            h = o * jnp.tanh(c)
            return (h, c), h

        init = (jnp.zeros((B, H), jnp.float32), jnp.zeros((B, H), jnp.float32))
        _, x = jax.lax.scan(step, init, x)
    return jnp.max(x, axis=0)


if __name__ == "__main__":
    # Small shapes implied by the module: x (B, T, glove_dim)
    B, T = 2, 8
    glove_dim, enc_hid, rnn_layers = 8, 32, 2

    key = jax.random.PRNGKey(0)
    key, kx = jax.random.split(key)
    x = jax.random.normal(kx, (B, T, glove_dim), jnp.float32)

    params = init_params(key, glove_dim, enc_hid, rnn_layers)

    out = gru_attn_forward(x, params)
    out = jax.block_until_ready(out)
    assert out.shape == (B, enc_hid), out.shape

    ref = jax.block_until_ready(gru_attn_reference(x, params))
    assert jnp.allclose(out, ref, atol=1e-4, rtol=1e-4), (
        float(jnp.max(jnp.abs(out - ref))))

    print("KERNEL_OK")
</pallas_src>

<mosaic_0001>
module attributes {stable_mosaic.version = 11 : i64} {
  func.func @_lstm_rec_kernel(%arg0: i32, %arg1: i32, %arg2: memref<8x8x512xf32, #tpu.memory_space<vmem>>, %arg3: memref<128x512xf32, #tpu.memory_space<vmem>>, %arg4: memref<8x8x128xf32, #tpu.memory_space<vmem>>, %arg5: memref<8x128xf32, #tpu.memory_space<vmem>>, %arg6: memref<8x128xf32, #tpu.memory_space<vmem>>, %arg7: memref<8x128xf32, #tpu.memory_space<vmem>>) attributes {dimension_semantics = [#tpu.dimension_semantics<parallel>, #tpu.dimension_semantics<arbitrary>], iteration_bounds = array<i64: 1, 1>, scalar_prefetch = 0 : i64, scratch_operands = 2 : i64, tpu.core_type = #tpu.core_type<tc>, window_params = [{transform_indices = @transform_0, window_bounds = array<i64: 8, 8, 512>}, {pipeline_mode = #tpu.pipeline_mode<synchronous>, transform_indices = @transform_1, window_bounds = array<i64: 128, 512>}, {transform_indices = @transform_2, window_bounds = array<i64: 8, 8, 128>}, {transform_indices = @transform_3, window_bounds = array<i64: 8, 128>}]} {
    %c0_i32 = arith.constant 0 : i32
    %0 = arith.cmpi eq, %arg1, %c0_i32 : i32
    %1 = arith.extui %0 : i1 to i32
    %c0_i32_0 = arith.constant 0 : i32
    %2 = arith.cmpi ne, %1, %c0_i32_0 : i32
    scf.if %2 {
      %cst_92 = arith.constant 0.000000e+00 : f32
      %297 = vector.broadcast %cst_92 : f32 to vector<8x128xf32>
      %c0_93 = arith.constant 0 : index
      %c0_94 = arith.constant 0 : index
      %298 = vector.load %arg6[%c0_93, %c0_94] : memref<8x128xf32, #tpu.memory_space<vmem>>, vector<8x128xf32>
      tpu.vector_store %arg6[%c0_93, %c0_94], %297 {strides = array<i32>} : memref<8x128xf32, #tpu.memory_space<vmem>>, vector<8x128xf32>,
      %cst_95 = arith.constant 0.000000e+00 : f32
      %299 = vector.broadcast %cst_95 : f32 to vector<8x128xf32>
      %c0_96 = arith.constant 0 : index
      %c0_97 = arith.constant 0 : index
      %300 = vector.load %arg7[%c0_96, %c0_97] : memref<8x128xf32, #tpu.memory_space<vmem>>, vector<8x128xf32>
      tpu.vector_store %arg7[%c0_96, %c0_97], %299 {strides = array<i32>} : memref<8x128xf32, #tpu.memory_space<vmem>>, vector<8x128xf32>,
      %cst_98 = arith.constant 0xFF800000 : f32
      %301 = vector.broadcast %cst_98 : f32 to vector<8x128xf32>
      %c0_99 = arith.constant 0 : index
      %c0_100 = arith.constant 0 : index
      %302 = vector.load %arg5[%c0_99, %c0_100] : memref<8x128xf32, #tpu.memory_space<vmem>>, vector<8x128xf32>
      tpu.vector_store %arg5[%c0_99, %c0_100], %301 {strides = array<i32>} : memref<8x128xf32, #tpu.memory_space<vmem>>, vector<8x128xf32>,
    } else {
    }
    %c0 = arith.constant 0 : index
    %c0_1 = arith.constant 0 : index
    %3 = vector.load %arg6[%c0, %c0_1] : memref<8x128xf32, #tpu.memory_space<vmem>>, vector<8x128xf32>
    %c0_2 = arith.constant 0 : index
    %c0_3 = arith.constant 0 : index
    %4 = vector.load %arg7[%c0_2, %c0_3] : memref<8x128xf32, #tpu.memory_space<vmem>>, vector<8x128xf32>
    %c0_4 = arith.constant 0 : index
    %c0_5 = arith.constant 0 : index
    %5 = vector.load %arg5[%c0_4, %c0_5] : memref<8x128xf32, #tpu.memory_space<vmem>>, vector<8x128xf32>
    %c0_i32_6 = arith.constant 0 : i32
    %6 = arith.index_cast %c0_i32_6 : i32 to index
    %c0_7 = arith.constant 0 : index
    %c0_8 = arith.constant 0 : index
    %7 = vector.load %arg2[%6, %c0_7, %c0_8] : memref<8x8x512xf32, #tpu.memory_space<vmem>>, vector<1x8x512xf32>
    %8 = vector.shape_cast %7 : vector<1x8x512xf32> to vector<8x512xf32>
    %c0_9 = arith.constant 0 : index
    %c0_10 = arith.constant 0 : index
    %9 = vector.load %arg3[%c0_9, %c0_10] : memref<128x512xf32, #tpu.memory_space<vmem>>, vector<128x512xf32>
    %cst = arith.constant dense<0.000000e+00> : vector<8x512xf32>
    %10 = tpu.matmul %3, %9, %cst {dimension_numbers = #tpu.dot_dimension_numbers<[1], [0], [0], [1], [0, 0, 1, 1], [], []>} : vector<8x128xf32>, vector<128x512xf32>, vector<8x512xf32> -> vector<8x512xf32>
    %11 = arith.addf %8, %10 : vector<8x512xf32>
    %12 = vector.extract_strided_slice %11 {offsets = [0, 0], sizes = [8, 128], strides = [1, 1]} : vector<8x512xf32> to vector<8x128xf32>
    %13 = arith.negf %12 : vector<8x128xf32>
    %14 = math.exp %13 : vector<8x128xf32>
    %cst_11 = arith.constant 1.000000e+00 : f32
    %15 = vector.broadcast %cst_11 : f32 to vector<8x128xf32>
    %16 = arith.addf %15, %14 : vector<8x128xf32>
    %17 = arith.divf %15, %16 : vector<8x128xf32>
    %18 = vector.extract_strided_slice %11 {offsets = [0, 128], sizes = [8, 128], strides = [1, 1]} : vector<8x512xf32> to vector<8x128xf32>
    %19 = arith.negf %18 : vector<8x128xf32>
    %20 = math.exp %19 : vector<8x128xf32>
    %cst_12 = arith.constant 1.000000e+00 : f32
    %21 = vector.broadcast %cst_12 : f32 to vector<8x128xf32>
    %22 = arith.addf %21, %20 : vector<8x128xf32>
    %23 = arith.divf %21, %22 : vector<8x128xf32>
    %24 = vector.extract_strided_slice %11 {offsets = [0, 256], sizes = [8, 128], strides = [1, 1]} : vector<8x512xf32> to vector<8x128xf32>
    %25 = math.tanh %24 : vector<8x128xf32>
    %26 = vector.extract_strided_slice %11 {offsets = [0, 384], sizes = [8, 128], strides = [1, 1]} : vector<8x512xf32> to vector<8x128xf32>
    %27 = arith.negf %26 : vector<8x128xf32>
    %28 = math.exp %27 : vector<8x128xf32>
    %cst_13 = arith.constant 1.000000e+00 : f32
    %29 = vector.broadcast %cst_13 : f32 to vector<8x128xf32>
    %30 = arith.addf %29, %28 : vector<8x128xf32>
    %31 = arith.divf %29, %30 : vector<8x128xf32>
    %32 = arith.mulf %23, %4 : vector<8x128xf32>
    %33 = arith.mulf %17, %25 : vector<8x128xf32>
    %34 = arith.addf %32, %33 : vector<8x128xf32>
    %35 = math.tanh %34 : vector<8x128xf32>
    %36 = arith.mulf %31, %35 : vector<8x128xf32>
    %37 = arith.index_cast %c0_i32_6 : i32 to index
    %c0_14 = arith.constant 0 : index
    %c0_15 = arith.constant 0 : index
    %38 = vector.load %arg4[%37, %c0_14, %c0_15] : memref<8x8x128xf32, #tpu.memory_space<vmem>>, vector<1x8x128xf32>
    %39 = vector.shape_cast %38 : vector<1x8x128xf32> to vector<8x128xf32>
    %40 = vector.shape_cast %36 : vector<8x128xf32> to vector<1x8x128xf32>
    tpu.vector_store %arg4[%37, %c0_14, %c0_15], %40 {strides = array<i32>} : memref<8x8x128xf32, #tpu.memory_space<vmem>>, vector<1x8x128xf32>,
    %41 = arith.maximumf %5, %36 : vector<8x128xf32>
    %c1_i32 = arith.constant 1 : i32
    %42 = arith.index_cast %c1_i32 : i32 to index
    %c0_16 = arith.constant 0 : index
    %c0_17 = arith.constant 0 : index
    %43 = vector.load %arg2[%42, %c0_16, %c0_17] : memref<8x8x512xf32, #tpu.memory_space<vmem>>, vector<1x8x512xf32>
    %44 = vector.shape_cast %43 : vector<1x8x512xf32> to vector<8x512xf32>
    %c0_18 = arith.constant 0 : index
    %c0_19 = arith.constant 0 : index
    %45 = vector.load %arg3[%c0_18, %c0_19] : memref<128x512xf32, #tpu.memory_space<vmem>>, vector<128x512xf32>
    %cst_20 = arith.constant dense<0.000000e+00> : vector<8x512xf32>
    %46 = tpu.matmul %36, %45, %cst_20 {dimension_numbers = #tpu.dot_dimension_numbers<[1], [0], [0], [1], [0, 0, 1, 1], [], []>} : vector<8x128xf32>, vector<128x512xf32>, vector<8x512xf32> -> vector<8x512xf32>
    %47 = arith.addf %44, %46 : vector<8x512xf32>
    %48 = vector.extract_strided_slice %47 {offsets = [0, 0], sizes = [8, 128], strides = [1, 1]} : vector<8x512xf32> to vector<8x128xf32>
    %49 = arith.negf %48 : vector<8x128xf32>
    %50 = math.exp %49 : vector<8x128xf32>
    %cst_21 = arith.constant 1.000000e+00 : f32
    %51 = vector.broadcast %cst_21 : f32 to vector<8x128xf32>
    %52 = arith.addf %51, %50 : vector<8x128xf32>
    %53 = arith.divf %51, %52 : vector<8x128xf32>
    %54 = vector.extract_strided_slice %47 {offsets = [0, 128], sizes = [8, 128], strides = [1, 1]} : vector<8x512xf32> to vector<8x128xf32>
    %55 = arith.negf %54 : vector<8x128xf32>
    %56 = math.exp %55 : vector<8x128xf32>
    %cst_22 = arith.constant 1.000000e+00 : f32
    %57 = vector.broadcast %cst_22 : f32 to vector<8x128xf32>
    %58 = arith.addf %57, %56 : vector<8x128xf32>
    %59 = arith.divf %57, %58 : vector<8x128xf32>
    %60 = vector.extract_strided_slice %47 {offsets = [0, 256], sizes = [8, 128], strides = [1, 1]} : vector<8x512xf32> to vector<8x128xf32>
    %61 = math.tanh %60 : vector<8x128xf32>
    %62 = vector.extract_strided_slice %47 {offsets = [0, 384], sizes = [8, 128], strides = [1, 1]} : vector<8x512xf32> to vector<8x128xf32>
    %63 = arith.negf %62 : vector<8x128xf32>
    %64 = math.exp %63 : vector<8x128xf32>
    %cst_23 = arith.constant 1.000000e+00 : f32
    %65 = vector.broadcast %cst_23 : f32 to vector<8x128xf32>
    %66 = arith.addf %65, %64 : vector<8x128xf32>
    %67 = arith.divf %65, %66 : vector<8x128xf32>
    %68 = arith.mulf %59, %34 : vector<8x128xf32>
    %69 = arith.mulf %53, %61 : vector<8x128xf32>
    %70 = arith.addf %68, %69 : vector<8x128xf32>
    %71 = math.tanh %70 : vector<8x128xf32>
    %72 = arith.mulf %67, %71 : vector<8x128xf32>
    %73 = arith.index_cast %c1_i32 : i32 to index
    %c0_24 = arith.constant 0 : index
    %c0_25 = arith.constant 0 : index
    %74 = vector.load %arg4[%73, %c0_24, %c0_25] : memref<8x8x128xf32, #tpu.memory_space<vmem>>, vector<1x8x128xf32>
    %75 = vector.shape_cast %74 : vector<1x8x128xf32> to vector<8x128xf32>
    %76 = vector.shape_cast %72 : vector<8x128xf32> to vector<1x8x128xf32>
    tpu.vector_store %arg4[%73, %c0_24, %c0_25], %76 {strides = array<i32>} : memref<8x8x128xf32, #tpu.memory_space<vmem>>, vector<1x8x128xf32>,
    %77 = arith.maximumf %41, %72 : vector<8x128xf32>
    %c2_i32 = arith.constant 2 : i32
    %78 = arith.index_cast %c2_i32 : i32 to index
    %c0_26 = arith.constant 0 : index
    %c0_27 = arith.constant 0 : index
    %79 = vector.load %arg2[%78, %c0_26, %c0_27] : memref<8x8x512xf32, #tpu.memory_space<vmem>>, vector<1x8x512xf32>
    %80 = vector.shape_cast %79 : vector<1x8x512xf32> to vector<8x512xf32>
    %c0_28 = arith.constant 0 : index
    %c0_29 = arith.constant 0 : index
    %81 = vector.load %arg3[%c0_28, %c0_29] : memref<128x512xf32, #tpu.memory_space<vmem>>, vector<128x512xf32>
    %cst_30 = arith.constant dense<0.000000e+00> : vector<8x512xf32>
    %82 = tpu.matmul %72, %81, %cst_30 {dimension_numbers = #tpu.dot_dimension_numbers<[1], [0], [0], [1], [0, 0, 1, 1], [], []>} : vector<8x128xf32>, vector<128x512xf32>, vector<8x512xf32> -> vector<8x512xf32>
    %83 = arith.addf %80, %82 : vector<8x512xf32>
    %84 = vector.extract_strided_slice %83 {offsets = [0, 0], sizes = [8, 128], strides = [1, 1]} : vector<8x512xf32> to vector<8x128xf32>
    %85 = arith.negf %84 : vector<8x128xf32>
    %86 = math.exp %85 : vector<8x128xf32>
    %cst_31 = arith.constant 1.000000e+00 : f32
    %87 = vector.broadcast %cst_31 : f32 to vector<8x128xf32>
    %88 = arith.addf %87, %86 : vector<8x128xf32>
    %89 = arith.divf %87, %88 : vector<8x128xf32>
    %90 = vector.extract_strided_slice %83 {offsets = [0, 128], sizes = [8, 128], strides = [1, 1]} : vector<8x512xf32> to vector<8x128xf32>
    %91 = arith.negf %90 : vector<8x128xf32>
    %92 = math.exp %91 : vector<8x128xf32>
    %cst_32 = arith.constant 1.000000e+00 : f32
    %93 = vector.broadcast %cst_32 : f32 to vector<8x128xf32>
    %94 = arith.addf %93, %92 : vector<8x128xf32>
    %95 = arith.divf %93, %94 : vector<8x128xf32>
    %96 = vector.extract_strided_slice %83 {offsets = [0, 256], sizes = [8, 128], strides = [1, 1]} : vector<8x512xf32> to vector<8x128xf32>
    %97 = math.tanh %96 : vector<8x128xf32>
    %98 = vector.extract_strided_slice %83 {offsets = [0, 384], sizes = [8, 128], strides = [1, 1]} : vector<8x512xf32> to vector<8x128xf32>
    %99 = arith.negf %98 : vector<8x128xf32>
    %100 = math.exp %99 : vector<8x128xf32>
    %cst_33 = arith.constant 1.000000e+00 : f32
    %101 = vector.broadcast %cst_33 : f32 to vector<8x128xf32>
    %102 = arith.addf %101, %100 : vector<8x128xf32>
    %103 = arith.divf %101, %102 : vector<8x128xf32>
    %104 = arith.mulf %95, %70 : vector<8x128xf32>
    %105 = arith.mulf %89, %97 : vector<8x128xf32>
    %106 = arith.addf %104, %105 : vector<8x128xf32>
    %107 = math.tanh %106 : vector<8x128xf32>
    %108 = arith.mulf %103, %107 : vector<8x128xf32>
    %109 = arith.index_cast %c2_i32 : i32 to index
    %c0_34 = arith.constant 0 : index
    %c0_35 = arith.constant 0 : index
    %110 = vector.load %arg4[%109, %c0_34, %c0_35] : memref<8x8x128xf32, #tpu.memory_space<vmem>>, vector<1x8x128xf32>
    %111 = vector.shape_cast %110 : vector<1x8x128xf32> to vector<8x128xf32>
    %112 = vector.shape_cast %108 : vector<8x128xf32> to vector<1x8x128xf32>
    tpu.vector_store %arg4[%109, %c0_34, %c0_35], %112 {strides = array<i32>} : memref<8x8x128xf32, #tpu.memory_space<vmem>>, vector<1x8x128xf32>,
    %113 = arith.maximumf %77, %108 : vector<8x128xf32>
    %c3_i32 = arith.constant 3 : i32
    %114 = arith.index_cast %c3_i32 : i32 to index
    %c0_36 = arith.constant 0 : index
    %c0_37 = arith.constant 0 : index
    %115 = vector.load %arg2[%114, %c0_36, %c0_37] : memref<8x8x512xf32, #tpu.memory_space<vmem>>, vector<1x8x512xf32>
    %116 = vector.shape_cast %115 : vector<1x8x512xf32> to vector<8x512xf32>
    %c0_38 = arith.constant 0 : index
    %c0_39 = arith.constant 0 : index
    %117 = vector.load %arg3[%c0_38, %c0_39] : memref<128x512xf32, #tpu.memory_space<vmem>>, vector<128x512xf32>
    %cst_40 = arith.constant dense<0.000000e+00> : vector<8x512xf32>
    %118 = tpu.matmul %108, %117, %cst_40 {dimension_numbers = #tpu.dot_dimension_numbers<[1], [0], [0], [1], [0, 0, 1, 1], [], []>} : vector<8x128xf32>, vector<128x512xf32>, vector<8x512xf32> -> vector<8x512xf32>
    %119 = arith.addf %116, %118 : vector<8x512xf32>
    %120 = vector.extract_strided_slice %119 {offsets = [0, 0], sizes = [8, 128], strides = [1, 1]} : vector<8x512xf32> to vector<8x128xf32>
    %121 = arith.negf %120 : vector<8x128xf32>
    %122 = math.exp %121 : vector<8x128xf32>
    %cst_41 = arith.constant 1.000000e+00 : f32
    %123 = vector.broadcast %cst_41 : f32 to vector<8x128xf32>
    %124 = arith.addf %123, %122 : vector<8x128xf32>
    %125 = arith.divf %123, %124 : vector<8x128xf32>
    %126 = vector.extract_strided_slice %119 {offsets = [0, 128], sizes = [8, 128], strides = [1, 1]} : vector<8x512xf32> to vector<8x128xf32>
    %127 = arith.negf %126 : vector<8x128xf32>
    %128 = math.exp %127 : vector<8x128xf32>
    %cst_42 = arith.constant 1.000000e+00 : f32
    %129 = vector.broadcast %cst_42 : f32 to vector<8x128xf32>
    %130 = arith.addf %129, %128 : vector<8x128xf32>
    %131 = arith.divf %129, %130 : vector<8x128xf32>
    %132 = vector.extract_strided_slice %119 {offsets = [0, 256], sizes = [8, 128], strides = [1, 1]} : vector<8x512xf32> to vector<8x128xf32>
    %133 = math.tanh %132 : vector<8x128xf32>
    %134 = vector.extract_strided_slice %119 {offsets = [0, 384], sizes = [8, 128], strides = [1, 1]} : vector<8x512xf32> to vector<8x128xf32>
    %135 = arith.negf %134 : vector<8x128xf32>
    %136 = math.exp %135 : vector<8x128xf32>
    %cst_43 = arith.constant 1.000000e+00 : f32
    %137 = vector.broadcast %cst_43 : f32 to vector<8x128xf32>
    %138 = arith.addf %137, %136 : vector<8x128xf32>
    %139 = arith.divf %137, %138 : vector<8x128xf32>
    %140 = arith.mulf %131, %106 : vector<8x128xf32>
    %141 = arith.mulf %125, %133 : vector<8x128xf32>
    %142 = arith.addf %140, %141 : vector<8x128xf32>
    %143 = math.tanh %142 : vector<8x128xf32>
    %144 = arith.mulf %139, %143 : vector<8x128xf32>
    %145 = arith.index_cast %c3_i32 : i32 to index
    %c0_44 = arith.constant 0 : index
    %c0_45 = arith.constant 0 : index
    %146 = vector.load %arg4[%145, %c0_44, %c0_45] : memref<8x8x128xf32, #tpu.memory_space<vmem>>, vector<1x8x128xf32>
    %147 = vector.shape_cast %146 : vector<1x8x128xf32> to vector<8x128xf32>
    %148 = vector.shape_cast %144 : vector<8x128xf32> to vector<1x8x128xf32>
    tpu.vector_store %arg4[%145, %c0_44, %c0_45], %148 {strides = array<i32>} : memref<8x8x128xf32, #tpu.memory_space<vmem>>, vector<1x8x128xf32>,
    %149 = arith.maximumf %113, %144 : vector<8x128xf32>
    %c4_i32 = arith.constant 4 : i32
    %150 = arith.index_cast %c4_i32 : i32 to index
    %c0_46 = arith.constant 0 : index
    %c0_47 = arith.constant 0 : index
    %151 = vector.load %arg2[%150, %c0_46, %c0_47] : memref<8x8x512xf32, #tpu.memory_space<vmem>>, vector<1x8x512xf32>
    %152 = vector.shape_cast %151 : vector<1x8x512xf32> to vector<8x512xf32>
    %c0_48 = arith.constant 0 : index
    %c0_49 = arith.constant 0 : index
    %153 = vector.load %arg3[%c0_48, %c0_49] : memref<128x512xf32, #tpu.memory_space<vmem>>, vector<128x512xf32>
    %cst_50 = arith.constant dense<0.000000e+00> : vector<8x512xf32>
    %154 = tpu.matmul %144, %153, %cst_50 {dimension_numbers = #tpu.dot_dimension_numbers<[1], [0], [0], [1], [0, 0, 1, 1], [], []>} : vector<8x128xf32>, vector<128x512xf32>, vector<8x512xf32> -> vector<8x512xf32>
    %155 = arith.addf %152, %154 : vector<8x512xf32>
    %156 = vector.extract_strided_slice %155 {offsets = [0, 0], sizes = [8, 128], strides = [1, 1]} : vector<8x512xf32> to vector<8x128xf32>
    %157 = arith.negf %156 : vector<8x128xf32>
    %158 = math.exp %157 : vector<8x128xf32>
    %cst_51 = arith.constant 1.000000e+00 : f32
    %159 = vector.broadcast %cst_51 : f32 to vector<8x128xf32>
    %160 = arith.addf %159, %158 : vector<8x128xf32>
    %161 = arith.divf %159, %160 : vector<8x128xf32>
    %162 = vector.extract_strided_slice %155 {offsets = [0, 128], sizes = [8, 128], strides = [1, 1]} : vector<8x512xf32> to vector<8x128xf32>
    %163 = arith.negf %162 : vector<8x128xf32>
    %164 = math.exp %163 : vector<8x128xf32>
    %cst_52 = arith.constant 1.000000e+00 : f32
    %165 = vector.broadcast %cst_52 : f32 to vector<8x128xf32>
    %166 = arith.addf %165, %164 : vector<8x128xf32>
    %167 = arith.divf %165, %166 : vector<8x128xf32>
    %168 = vector.extract_strided_slice %155 {offsets = [0, 256], sizes = [8, 128], strides = [1, 1]} : vector<8x512xf32> to vector<8x128xf32>
    %169 = math.tanh %168 : vector<8x128xf32>
    %170 = vector.extract_strided_slice %155 {offsets = [0, 384], sizes = [8, 128], strides = [1, 1]} : vector<8x512xf32> to vector<8x128xf32>
    %171 = arith.negf %170 : vector<8x128xf32>
    %172 = math.exp %171 : vector<8x128xf32>
    %cst_53 = arith.constant 1.000000e+00 : f32
    %173 = vector.broadcast %cst_53 : f32 to vector<8x128xf32>
    %174 = arith.addf %173, %172 : vector<8x128xf32>
    %175 = arith.divf %173, %174 : vector<8x128xf32>
    %176 = arith.mulf %167, %142 : vector<8x128xf32>
    %177 = arith.mulf %161, %169 : vector<8x128xf32>
    %178 = arith.addf %176, %177 : vector<8x128xf32>
    %179 = math.tanh %178 : vector<8x128xf32>
    %180 = arith.mulf %175, %179 : vector<8x128xf32>
    %181 = arith.index_cast %c4_i32 : i32 to index
    %c0_54 = arith.constant 0 : index
    %c0_55 = arith.constant 0 : index
    %182 = vector.load %arg4[%181, %c0_54, %c0_55] : memref<8x8x128xf32, #tpu.memory_space<vmem>>, vector<1x8x128xf32>
    %183 = vector.shape_cast %182 : vector<1x8x128xf32> to vector<8x128xf32>
    %184 = vector.shape_cast %180 : vector<8x128xf32> to vector<1x8x128xf32>
    tpu.vector_store %arg4[%181, %c0_54, %c0_55], %184 {strides = array<i32>} : memref<8x8x128xf32, #tpu.memory_space<vmem>>, vector<1x8x128xf32>,
    %185 = arith.maximumf %149, %180 : vector<8x128xf32>
    %c5_i32 = arith.constant 5 : i32
    %186 = arith.index_cast %c5_i32 : i32 to index
    %c0_56 = arith.constant 0 : index
    %c0_57 = arith.constant 0 : index
    %187 = vector.load %arg2[%186, %c0_56, %c0_57] : memref<8x8x512xf32, #tpu.memory_space<vmem>>, vector<1x8x512xf32>
    %188 = vector.shape_cast %187 : vector<1x8x512xf32> to vector<8x512xf32>
    %c0_58 = arith.constant 0 : index
    %c0_59 = arith.constant 0 : index
    %189 = vector.load %arg3[%c0_58, %c0_59] : memref<128x512xf32, #tpu.memory_space<vmem>>, vector<128x512xf32>
    %cst_60 = arith.constant dense<0.000000e+00> : vector<8x512xf32>
    %190 = tpu.matmul %180, %189, %cst_60 {dimension_numbers = #tpu.dot_dimension_numbers<[1], [0], [0], [1], [0, 0, 1, 1], [], []>} : vector<8x128xf32>, vector<128x512xf32>, vector<8x512xf32> -> vector<8x512xf32>
    %191 = arith.addf %188, %190 : vector<8x512xf32>
    %192 = vector.extract_strided_slice %191 {offsets = [0, 0], sizes = [8, 128], strides = [1, 1]} : vector<8x512xf32> to vector<8x128xf32>
    %193 = arith.negf %192 : vector<8x128xf32>
    %194 = math.exp %193 : vector<8x128xf32>
    %cst_61 = arith.constant 1.000000e+00 : f32
    %195 = vector.broadcast %cst_61 : f32 to vector<8x128xf32>
    %196 = arith.addf %195, %194 : vector<8x128xf32>
    %197 = arith.divf %195, %196 : vector<8x128xf32>
    %198 = vector.extract_strided_slice %191 {offsets = [0, 128], sizes = [8, 128], strides = [1, 1]} : vector<8x512xf32> to vector<8x128xf32>
    %199 = arith.negf %198 : vector<8x128xf32>
    %200 = math.exp %199 : vector<8x128xf32>
    %cst_62 = arith.constant 1.000000e+00 : f32
    %201 = vector.broadcast %cst_62 : f32 to vector<8x128xf32>
    %202 = arith.addf %201, %200 : vector<8x128xf32>
    %203 = arith.divf %201, %202 : vector<8x128xf32>
    %204 = vector.extract_strided_slice %191 {offsets = [0, 256], sizes = [8, 128], strides = [1, 1]} : vector<8x512xf32> to vector<8x128xf32>
    %205 = math.tanh %204 : vector<8x128xf32>
    %206 = vector.extract_strided_slice %191 {offsets = [0, 384], sizes = [8, 128], strides = [1, 1]} : vector<8x512xf32> to vector<8x128xf32>
    %207 = arith.negf %206 : vector<8x128xf32>
    %208 = math.exp %207 : vector<8x128xf32>
    %cst_63 = arith.constant 1.000000e+00 : f32
    %209 = vector.broadcast %cst_63 : f32 to vector<8x128xf32>
    %210 = arith.addf %209, %208 : vector<8x128xf32>
    %211 = arith.divf %209, %210 : vector<8x128xf32>
    %212 = arith.mulf %203, %178 : vector<8x128xf32>
    %213 = arith.mulf %197, %205 : vector<8x128xf32>
    %214 = arith.addf %212, %213 : vector<8x128xf32>
    %215 = math.tanh %214 : vector<8x128xf32>
    %216 = arith.mulf %211, %215 : vector<8x128xf32>
    %217 = arith.index_cast %c5_i32 : i32 to index
    %c0_64 = arith.constant 0 : index
    %c0_65 = arith.constant 0 : index
    %218 = vector.load %arg4[%217, %c0_64, %c0_65] : memref<8x8x128xf32, #tpu.memory_space<vmem>>, vector<1x8x128xf32>
    %219 = vector.shape_cast %218 : vector<1x8x128xf32> to vector<8x128xf32>
    %220 = vector.shape_cast %216 : vector<8x128xf32> to vector<1x8x128xf32>
    tpu.vector_store %arg4[%217, %c0_64, %c0_65], %220 {strides = array<i32>} : memref<8x8x128xf32, #tpu.memory_space<vmem>>, vector<1x8x128xf32>,
    %221 = arith.maximumf %185, %216 : vector<8x128xf32>
    %c6_i32 = arith.constant 6 : i32
    %222 = arith.index_cast %c6_i32 : i32 to index
    %c0_66 = arith.constant 0 : index
    %c0_67 = arith.constant 0 : index
    %223 = vector.load %arg2[%222, %c0_66, %c0_67] : memref<8x8x512xf32, #tpu.memory_space<vmem>>, vector<1x8x512xf32>
    %224 = vector.shape_cast %223 : vector<1x8x512xf32> to vector<8x512xf32>
    %c0_68 = arith.constant 0 : index
    %c0_69 = arith.constant 0 : index
    %225 = vector.load %arg3[%c0_68, %c0_69] : memref<128x512xf32, #tpu.memory_space<vmem>>, vector<128x512xf32>
    %cst_70 = arith.constant dense<0.000000e+00> : vector<8x512xf32>
    %226 = tpu.matmul %216, %225, %cst_70 {dimension_numbers = #tpu.dot_dimension_numbers<[1], [0], [0], [1], [0, 0, 1, 1], [], []>} : vector<8x128xf32>, vector<128x512xf32>, vector<8x512xf32> -> vector<8x512xf32>
    %227 = arith.addf %224, %226 : vector<8x512xf32>
    %228 = vector.extract_strided_slice %227 {offsets = [0, 0], sizes = [8, 128], strides = [1, 1]} : vector<8x512xf32> to vector<8x128xf32>
    %229 = arith.negf %228 : vector<8x128xf32>
    %230 = math.exp %229 : vector<8x128xf32>
    %cst_71 = arith.constant 1.000000e+00 : f32
    %231 = vector.broadcast %cst_71 : f32 to vector<8x128xf32>
    %232 = arith.addf %231, %230 : vector<8x128xf32>
    %233 = arith.divf %231, %232 : vector<8x128xf32>
    %234 = vector.extract_strided_slice %227 {offsets = [0, 128], sizes = [8, 128], strides = [1, 1]} : vector<8x512xf32> to vector<8x128xf32>
    %235 = arith.negf %234 : vector<8x128xf32>
    %236 = math.exp %235 : vector<8x128xf32>
    %cst_72 = arith.constant 1.000000e+00 : f32
    %237 = vector.broadcast %cst_72 : f32 to vector<8x128xf32>
    %238 = arith.addf %237, %236 : vector<8x128xf32>
    %239 = arith.divf %237, %238 : vector<8x128xf32>
    %240 = vector.extract_strided_slice %227 {offsets = [0, 256], sizes = [8, 128], strides = [1, 1]} : vector<8x512xf32> to vector<8x128xf32>
    %241 = math.tanh %240 : vector<8x128xf32>
    %242 = vector.extract_strided_slice %227 {offsets = [0, 384], sizes = [8, 128], strides = [1, 1]} : vector<8x512xf32> to vector<8x128xf32>
    %243 = arith.negf %242 : vector<8x128xf32>
    %244 = math.exp %243 : vector<8x128xf32>
    %cst_73 = arith.constant 1.000000e+00 : f32
    %245 = vector.broadcast %cst_73 : f32 to vector<8x128xf32>
    %246 = arith.addf %245, %244 : vector<8x128xf32>
    %247 = arith.divf %245, %246 : vector<8x128xf32>
    %248 = arith.mulf %239, %214 : vector<8x128xf32>
    %249 = arith.mulf %233, %241 : vector<8x128xf32>
    %250 = arith.addf %248, %249 : vector<8x128xf32>
    %251 = math.tanh %250 : vector<8x128xf32>
    %252 = arith.mulf %247, %251 : vector<8x128xf32>
    %253 = arith.index_cast %c6_i32 : i32 to index
    %c0_74 = arith.constant 0 : index
    %c0_75 = arith.constant 0 : index
    %254 = vector.load %arg4[%253, %c0_74, %c0_75] : memref<8x8x128xf32, #tpu.memory_space<vmem>>, vector<1x8x128xf32>
    %255 = vector.shape_cast %254 : vector<1x8x128xf32> to vector<8x128xf32>
    %256 = vector.shape_cast %252 : vector<8x128xf32> to vector<1x8x128xf32>
    tpu.vector_store %arg4[%253, %c0_74, %c0_75], %256 {strides = array<i32>} : memref<8x8x128xf32, #tpu.memory_space<vmem>>, vector<1x8x128xf32>,
    %257 = arith.maximumf %221, %252 : vector<8x128xf32>
    %c7_i32 = arith.constant 7 : i32
    %258 = arith.index_cast %c7_i32 : i32 to index
    %c0_76 = arith.constant 0 : index
    %c0_77 = arith.constant 0 : index
    %259 = vector.load %arg2[%258, %c0_76, %c0_77] : memref<8x8x512xf32, #tpu.memory_space<vmem>>, vector<1x8x512xf32>
    %260 = vector.shape_cast %259 : vector<1x8x512xf32> to vector<8x512xf32>
    %c0_78 = arith.constant 0 : index
    %c0_79 = arith.constant 0 : index
    %261 = vector.load %arg3[%c0_78, %c0_79] : memref<128x512xf32, #tpu.memory_space<vmem>>, vector<128x512xf32>
    %cst_80 = arith.constant dense<0.000000e+00> : vector<8x512xf32>
    %262 = tpu.matmul %252, %261, %cst_80 {dimension_numbers = #tpu.dot_dimension_numbers<[1], [0], [0], [1], [0, 0, 1, 1], [], []>} : vector<8x128xf32>, vector<128x512xf32>, vector<8x512xf32> -> vector<8x512xf32>
    %263 = arith.addf %260, %262 : vector<8x512xf32>
    %264 = vector.extract_strided_slice %263 {offsets = [0, 0], sizes = [8, 128], strides = [1, 1]} : vector<8x512xf32> to vector<8x128xf32>
    %265 = arith.negf %264 : vector<8x128xf32>
    %266 = math.exp %265 : vector<8x128xf32>
    %cst_81 = arith.constant 1.000000e+00 : f32
    %267 = vector.broadcast %cst_81 : f32 to vector<8x128xf32>
    %268 = arith.addf %267, %266 : vector<8x128xf32>
    %269 = arith.divf %267, %268 : vector<8x128xf32>
    %270 = vector.extract_strided_slice %263 {offsets = [0, 128], sizes = [8, 128], strides = [1, 1]} : vector<8x512xf32> to vector<8x128xf32>
    %271 = arith.negf %270 : vector<8x128xf32>
    %272 = math.exp %271 : vector<8x128xf32>
    %cst_82 = arith.constant 1.000000e+00 : f32
    %273 = vector.broadcast %cst_82 : f32 to vector<8x128xf32>
    %274 = arith.addf %273, %272 : vector<8x128xf32>
    %275 = arith.divf %273, %274 : vector<8x128xf32>
    %276 = vector.extract_strided_slice %263 {offsets = [0, 256], sizes = [8, 128], strides = [1, 1]} : vector<8x512xf32> to vector<8x128xf32>
    %277 = math.tanh %276 : vector<8x128xf32>
    %278 = vector.extract_strided_slice %263 {offsets = [0, 384], sizes = [8, 128], strides = [1, 1]} : vector<8x512xf32> to vector<8x128xf32>
    %279 = arith.negf %278 : vector<8x128xf32>
    %280 = math.exp %279 : vector<8x128xf32>
    %cst_83 = arith.constant 1.000000e+00 : f32
    %281 = vector.broadcast %cst_83 : f32 to vector<8x128xf32>
    %282 = arith.addf %281, %280 : vector<8x128xf32>
    %283 = arith.divf %281, %282 : vector<8x128xf32>
    %284 = arith.mulf %275, %250 : vector<8x128xf32>
    %285 = arith.mulf %269, %277 : vector<8x128xf32>
    %286 = arith.addf %284, %285 : vector<8x128xf32>
    %287 = math.tanh %286 : vector<8x128xf32>
    %288 = arith.mulf %283, %287 : vector<8x128xf32>
    %289 = arith.index_cast %c7_i32 : i32 to index
    %c0_84 = arith.constant 0 : index
    %c0_85 = arith.constant 0 : index
    %290 = vector.load %arg4[%289, %c0_84, %c0_85] : memref<8x8x128xf32, #tpu.memory_space<vmem>>, vector<1x8x128xf32>
    %291 = vector.shape_cast %290 : vector<1x8x128xf32> to vector<8x128xf32>
    %292 = vector.shape_cast %288 : vector<8x128xf32> to vector<1x8x128xf32>
    tpu.vector_store %arg4[%289, %c0_84, %c0_85], %292 {strides = array<i32>} : memref<8x8x128xf32, #tpu.memory_space<vmem>>, vector<1x8x128xf32>,
    %293 = arith.maximumf %257, %288 : vector<8x128xf32>
    %c8_i32 = arith.constant 8 : i32
    %c0_86 = arith.constant 0 : index
    %c0_87 = arith.constant 0 : index
    %294 = vector.load %arg6[%c0_86, %c0_87] : memref<8x128xf32, #tpu.memory_space<vmem>>, vector<8x128xf32>
    tpu.vector_store %arg6[%c0_86, %c0_87], %288 {strides = array<i32>} : memref<8x128xf32, #tpu.memory_space<vmem>>, vector<8x128xf32>,
    %c0_88 = arith.constant 0 : index
    %c0_89 = arith.constant 0 : index
    %295 = vector.load %arg7[%c0_88, %c0_89] : memref<8x128xf32, #tpu.memory_space<vmem>>, vector<8x128xf32>
    tpu.vector_store %arg7[%c0_88, %c0_89], %286 {strides = array<i32>} : memref<8x128xf32, #tpu.memory_space<vmem>>, vector<8x128xf32>,
    %c0_90 = arith.constant 0 : index
    %c0_91 = arith.constant 0 : index
    %296 = vector.load %arg5[%c0_90, %c0_91] : memref<8x128xf32, #tpu.memory_space<vmem>>, vector<8x128xf32>
    tpu.vector_store %arg5[%c0_90, %c0_91], %293 {strides = array<i32>} : memref<8x128xf32, #tpu.memory_space<vmem>>, vector<8x128xf32>,
    return
  }
  func.func @transform_0(%arg0: i32, %arg1: i32) -> (i32, i32, i32) {
    %c0_i32 = arith.constant 0 : i32
    %c0_i32_0 = arith.constant 0 : i32
    return %arg1, %arg0, %c0_i32 : i32, i32, i32
  }
  func.func @transform_1(%arg0: i32, %arg1: i32) -> (i32, i32) {
    %c0_i32 = arith.constant 0 : i32
    %c0_i32_0 = arith.constant 0 : i32
    %c0_i32_1 = arith.constant 0 : i32
    return %c0_i32, %c0_i32_0 : i32, i32
  }
  func.func @transform_2(%arg0: i32, %arg1: i32) -> (i32, i32, i32) {
    %c0_i32 = arith.constant 0 : i32
    %c0_i32_0 = arith.constant 0 : i32
    return %arg1, %arg0, %c0_i32 : i32, i32, i32
  }
  func.func @transform_3(%arg0: i32, %arg1: i32) -> (i32, i32) {
    %c0_i32 = arith.constant 0 : i32
    %c0_i32_0 = arith.constant 0 : i32
    return %arg0, %c0_i32 : i32, i32
  }
}

</mosaic_0001>

<bundles_post_ra>
// kernel: tpu_custom_call.1
= control target key start
LH: loop header
LB: loop body
LE: loop exit
PB: predicated region body
PF: predicated region fallthrough
CT: control target
= control target key end

     0   :  { %9 = vsyncpa [#allocation5], 0  ;;  %s3187_s0 = inlined_call_operand.hbm [shape: f32[8,8,512], index: 0, kind: input, shape index: {}]   ;;  %s3188_s1 = inlined_call_operand.hbm [shape: f32[128,512], index: 1, kind: input, shape index: {}]   ;;  %s3189_s2 = inlined_call_operand.hbm [shape: f32[8,8,128], index: 2, kind: output, shape index: {0}]   ;;  %s3190_s3 = inlined_call_operand.hbm [shape: f32[8,128], index: 3, kind: output, shape index: {1}]  }
   0x1   :  { %10 = vsyncpa [#allocation8], 0 }
   0x2   :  { %11 = vsyncpa [#allocation6], 0 }
   0x3   :  { %12 = vsyncpa [#allocation11], 0  ;;  %s17_s14 = sshll.u32 %s3187_s0, 4  ;;  %s2112_s15 = smov [#allocation4]   ;;  %s18_s14 = int_to_ptr.hbm [resolvable:$true] %s17_s14 }
   0x4   :  { %s19_s16 = sshll.u32 %s2112_s15, 4  ;;  %s30_s19 = sshll.u32 %s3188_s1, 4  ;;  %s20_s16 = int_to_ptr.vmem [resolvable:$true] %s19_s16  ;;  %s31_s19 = int_to_ptr.hbm [resolvable:$true] %s30_s19 }
   0x5   :  { %s2113_s20 = smov 512   ;;  %s2114_s21 = smov 32  }
   0x6   :  { %25 = dma.hbm_to_vmem [thread:$0]  %s18_s14, 4096, %s20_s16, [#allocation5], %s2113_s20, %s2113_s20, %s2114_s21  }
   0x7   :  { %s2115_s22 = smov [#allocation7]  }
   0x8   :  { %s32_s23 = sshll.u32 %s2115_s22, 4  ;;  %s33_s23 = int_to_ptr.vmem [resolvable:$true] %s32_s23 }
   0x9   :  { %38 = dma.hbm_to_vmem [thread:$0]  %s31_s19, 8192, %s33_s23, [#allocation8], %s2113_s20, %s2113_s20, %s2114_s21  }
   0xa   :  { %2104 = dma.done.wait [#allocation5], 4096  }
   0xb   :  { %2105 = vsyncadd [#allocation5], 4294963200 }
   0xc   :  { %2106 = dma.done.wait [#allocation8], 8192  }
   0xd   :  { %2107 = vsyncadd [#allocation8], 4294959104  ;;  %v2147_v0 = vld [vmem:[#allocation7 + $0x1e0] sm:$0xff]  ;;  %v2149_v1 = vld [vmem:[#allocation7 + $0x1e8] sm:$0xff]  ;;  %v2116_v60 = vmov 0.0   ;;  %s2117_s0 = smov [#allocation9]  }
   0xe   :  { %3229 = vst [vmem:[#allocation16_spill] sm:$0xff] %v2147_v0  ;;  %v2151_v2 = vld [vmem:[#allocation7 + $0x1f8] sm:$0xff]  ;;  %125 = vmatpush.msra.mxu0 %v2147_v0  ;;  %145 = vmatpush.msra.mxu1 %v2149_v1  ;;  %v2155_v3 = vld [vmem:[#allocation7 + $0x1c0] sm:$0xff]  ;;  %v2157_v4 = vld [vmem:[#allocation7 + $0x1c8] sm:$0xff]  ;;  %s1814_s1 = sshll.u32 %s2117_s0, 4  ;;  %s1816_s26 = sshll.u32 %s3189_s2, 4  ;;  %s1815_s1 = int_to_ptr.vmem [resolvable:$true] %s1814_s1  ;;  %s1817_s26 = int_to_ptr.hbm [resolvable:$true] %s1816_s26 }
   0xf   :  { %v2159_v5 = vld [vmem:[#allocation7 + $0x1d8] sm:$0xff]  ;;  %185 = vmatpush.msra.mxu3 %v2151_v2  ;;  %v2162_v6 = vld [vmem:[#allocation7 + $0x1a0] sm:$0xff]  ;;  %v2164_v7 = vld [vmem:[#allocation7 + $0x1a8] sm:$0xff]  ;;  %s2118_s27 = smov [#allocation10]   ;;  %s1830_s4 = sshll.u32 %s3190_s3, 4  ;;  %s1831_s4 = int_to_ptr.hbm [resolvable:$true] %s1830_s4 }
  0x10   :  { %126 = vmatpush.msra.mxu0 %v2155_v3  ;;  %146 = vmatpush.msra.mxu1 %v2157_v4  ;;  %v2168_v8 = vld [vmem:[#allocation7 + $0x1b8] sm:$0xff]  ;;  %v2171_v9 = vld [vmem:[#allocation7 + $0x180] sm:$0xff]  ;;  %v2173_v10 = vld [vmem:[#allocation7 + $0x188] sm:$0xff]  ;;  %s1828_s28 = sshll.u32 %s2118_s27, 4  ;;  %s2119_s2 = smov 128   ;;  %s1829_s28 = int_to_ptr.vmem [resolvable:$true] %s1828_s28 }
  0x11   :  { %186 = vmatpush.msra.mxu3 %v2159_v5  ;;  %v2177_v11 = vld [vmem:[#allocation7 + $0x198] sm:$0xff]  ;;  %v2180_v12 = vld [vmem:[#allocation7 + $0x160] sm:$0xff]  ;;  %v2182_v13 = vld [vmem:[#allocation7 + $0x168] sm:$0xff]  ;;  %s2120_s5 = smov 8  }
  0x12   :  { %127 = vmatpush.msra.mxu0 %v2162_v6  ;;  %147 = vmatpush.msra.mxu1 %v2164_v7  ;;  %v2186_v14 = vld [vmem:[#allocation7 + $0x178] sm:$0xff]  ;;  %v2189_v15 = vld [vmem:[#allocation7 + $0x140] sm:$0xff]  ;;  %v2191_v16 = vld [vmem:[#allocation7 + $0x148] sm:$0xff] }
  0x13   :  { %187 = vmatpush.msra.mxu3 %v2168_v8  ;;  %v2193_v17 = vld [vmem:[#allocation7 + $0x1f0] sm:$0xff]  ;;  %v2197_v18 = vld [vmem:[#allocation7 + $0x158] sm:$0xff]  ;;  %v2202_v20 = vld [vmem:[#allocation7 + $0x120] sm:$0xff] }
  0x14   :  { %128 = vmatpush.msra.mxu0 %v2171_v9  ;;  %148 = vmatpush.msra.mxu1 %v2173_v10  ;;  %v2199_v19 = vld [vmem:[#allocation7 + $0x1d0] sm:$0xff]  ;;  %v2204_v21 = vld [vmem:[#allocation7 + $0x128] sm:$0xff]  ;;  %v2209_v22 = vld [vmem:[#allocation7 + $0x138] sm:$0xff] }
  0x15   :  { %188 = vmatpush.msra.mxu3 %v2177_v11  ;;  %165 = vmatpush.msra.mxu2 %v2193_v17  ;;  %v2211_v23 = vld [vmem:[#allocation7 + $0x1b0] sm:$0xff]  ;;  %v2214_v24 = vld [vmem:[#allocation7 + $0x100] sm:$0xff]  ;;  %v2216_v25 = vld [vmem:[#allocation7 + $0x108] sm:$0xff] }
  0x16   :  { %129 = vmatpush.msra.mxu0 %v2180_v12  ;;  %149 = vmatpush.msra.mxu1 %v2182_v13  ;;  %v2221_v26 = vld [vmem:[#allocation7 + $0x118] sm:$0xff]  ;;  %v2223_v27 = vld [vmem:[#allocation7 + $0x190] sm:$0xff]  ;;  %v2226_v28 = vld [vmem:[#allocation7 + $0xe0] sm:$0xff] }
  0x17   :  { %189 = vmatpush.msra.mxu3 %v2186_v14  ;;  %166 = vmatpush.msra.mxu2 %v2199_v19  ;;  %v2228_v29 = vld [vmem:[#allocation7 + $0xe8] sm:$0xff]  ;;  %v2233_v30 = vld [vmem:[#allocation7 + $0xf8] sm:$0xff]  ;;  %v2235_v31 = vld [vmem:[#allocation7 + $0x170] sm:$0xff] }
  0x18   :  { %130 = vmatpush.msra.mxu0 %v2189_v15  ;;  %150 = vmatpush.msra.mxu1 %v2191_v16  ;;  %v2238_v32 = vld [vmem:[#allocation7 + $0xc0] sm:$0xff]  ;;  %v2240_v33 = vld [vmem:[#allocation7 + $0xc8] sm:$0xff]  ;;  %v2245_v34 = vld [vmem:[#allocation7 + $0xd8] sm:$0xff] }
  0x19   :  { %190 = vmatpush.msra.mxu3 %v2197_v18  ;;  %167 = vmatpush.msra.mxu2 %v2211_v23  ;;  %v2247_v35 = vld [vmem:[#allocation7 + $0x150] sm:$0xff]  ;;  %v2250_v36 = vld [vmem:[#allocation7 + $0xa0] sm:$0xff]  ;;  %v2252_v37 = vld [vmem:[#allocation7 + $0xa8] sm:$0xff] }
  0x1a   :  { %131 = vmatpush.msra.mxu0 %v2202_v20  ;;  %151 = vmatpush.msra.mxu1 %v2204_v21  ;;  %v2257_v38 = vld [vmem:[#allocation7 + $0xb8] sm:$0xff]  ;;  %v2259_v39 = vld [vmem:[#allocation7 + $0x130] sm:$0xff]  ;;  %v2262_v40 = vld [vmem:[#allocation7 + $0x80] sm:$0xff] }
  0x1b   :  { %191 = vmatpush.msra.mxu3 %v2209_v22  ;;  %168 = vmatpush.msra.mxu2 %v2223_v27  ;;  %v2264_v41 = vld [vmem:[#allocation7 + $0x88] sm:$0xff]  ;;  %v2269_v42 = vld [vmem:[#allocation7 + $0x98] sm:$0xff]  ;;  %v2271_v43 = vld [vmem:[#allocation7 + $0x110] sm:$0xff] }
  0x1c   :  { %132 = vmatpush.msra.mxu0 %v2214_v24  ;;  %152 = vmatpush.msra.mxu1 %v2216_v25  ;;  %v2274_v44 = vld [vmem:[#allocation7 + $0x60] sm:$0xff]  ;;  %v2276_v45 = vld [vmem:[#allocation7 + $0x68] sm:$0xff]  ;;  %v2281_v46 = vld [vmem:[#allocation7 + $0x78] sm:$0xff] }
  0x1d   :  { %192 = vmatpush.msra.mxu3 %v2221_v26  ;;  %169 = vmatpush.msra.mxu2 %v2235_v31  ;;  %v2283_v47 = vld [vmem:[#allocation7 + $0xf0] sm:$0xff]  ;;  %v2286_v48 = vld [vmem:[#allocation7 + $0x40] sm:$0xff]  ;;  %v2288_v49 = vld [vmem:[#allocation7 + $0x48] sm:$0xff] }
  0x1e   :  { %133 = vmatpush.msra.mxu0 %v2226_v28  ;;  %153 = vmatpush.msra.mxu1 %v2228_v29  ;;  %v2293_v50 = vld [vmem:[#allocation7 + $0x58] sm:$0xff]  ;;  %v2295_v51 = vld [vmem:[#allocation7 + $0xd0] sm:$0xff]  ;;  %v2298_v52 = vld [vmem:[#allocation7 + $0x20] sm:$0xff] }
  0x1f   :  { %193 = vmatpush.msra.mxu3 %v2233_v30  ;;  %170 = vmatpush.msra.mxu2 %v2247_v35  ;;  %v2300_v53 = vld [vmem:[#allocation7 + $0x28] sm:$0xff]  ;;  %v2305_v54 = vld [vmem:[#allocation7 + $0x38] sm:$0xff]  ;;  %v2307_v55 = vld [vmem:[#allocation7 + $0xb0] sm:$0xff] }
  0x20   :  { %134 = vmatpush.msra.mxu0 %v2238_v32  ;;  %154 = vmatpush.msra.mxu1 %v2240_v33  ;;  %v2310_v56 = vld [vmem:[#allocation7] sm:$0xff]  ;;  %v2312_v57 = vld [vmem:[#allocation7 + $0x8] sm:$0xff]  ;;  %v2317_v58 = vld [vmem:[#allocation7 + $0x18] sm:$0xff] }
  0x21   :  { %194 = vmatpush.msra.mxu3 %v2245_v34  ;;  %171 = vmatpush.msra.mxu2 %v2259_v39  ;;  %v2323_v59 = vld [vmem:[#allocation7 + $0x90] sm:$0xff] }
  0x22   :  { %135 = vmatpush.msra.mxu0 %v2250_v36  ;;  %155 = vmatpush.msra.mxu1 %v2252_v37  ;;  %v2326_v61 = vld [vmem:[#allocation7 + $0x70] sm:$0xff] }
  0x23   :  { %195 = vmatpush.msra.mxu3 %v2257_v38  ;;  %172 = vmatpush.msra.mxu2 %v2271_v43  ;;  %v2330_v62 = vld [vmem:[#allocation7 + $0x50] sm:$0xff] }
  0x24   :  { %136 = vmatpush.msra.mxu0 %v2262_v40  ;;  %156 = vmatpush.msra.mxu1 %v2264_v41  ;;  %v2336_v63 = vld [vmem:[#allocation7 + $0x30] sm:$0xff] }
  0x25   :  { %196 = vmatpush.msra.mxu3 %v2269_v42  ;;  %173 = vmatpush.msra.mxu2 %v2283_v47 }
  0x26   :  { %137 = vmatpush.msra.mxu0 %v2274_v44  ;;  %157 = vmatpush.msra.mxu1 %v2276_v45 }
  0x27   :  { %197 = vmatpush.msra.mxu3 %v2281_v46  ;;  %174 = vmatpush.msra.mxu2 %v2295_v51 }
  0x28   :  { %138 = vmatpush.msra.mxu0 %v2286_v48  ;;  %158 = vmatpush.msra.mxu1 %v2288_v49 }
  0x29   :  { %198 = vmatpush.msra.mxu3 %v2293_v50  ;;  %175 = vmatpush.msra.mxu2 %v2307_v55 }
  0x2a   :  { %139 = vmatpush.msra.mxu0 %v2298_v52  ;;  %159 = vmatpush.msra.mxu1 %v2300_v53 }
  0x2b   :  { %199 = vmatpush.msra.mxu3 %v2305_v54  ;;  %176 = vmatpush.msra.mxu2 %v2323_v59 }
  0x2c   :  { %140 = vmatpush.msra.mxu0 %v2310_v56  ;;  %160 = vmatpush.msra.mxu1 %v2312_v57 }
  0x2d   :  { %200 = vmatpush.msra.mxu3 %v2317_v58  ;;  %141 = vmatmul.f32.vlgmr.msra.gmra.mxu0 %v2116_v60 }
  0x2e   :  { %161 = vmatmul.f32.vlgmr.msra.gmra.mxu1 %v2116_v60  ;;  %201 = vmatmul.f32.vlgmr.msra.gmra.mxu3 %v2116_v60 }
  0x2f   :  { %343 = vmatpush.msrb.mxu0 %v2147_v0  ;;  %363 = vmatpush.msrb.mxu1 %v2149_v1  ;;  %v2342_v0 = vld [vmem:[#allocation7 + $0x10] sm:$0xff] }
  0x30   :  { %403 = vmatpush.msrb.mxu3 %v2151_v2  ;;  %177 = vmatpush.msra.mxu2 %v2326_v61 }
  0x31   :  { %344 = vmatpush.msrb.mxu0 %v2155_v3  ;;  %364 = vmatpush.msrb.mxu1 %v2157_v4 }
  0x32   :  { %404 = vmatpush.msrb.mxu3 %v2159_v5  ;;  %178 = vmatpush.msra.mxu2 %v2330_v62 }
  0x33   :  { %345 = vmatpush.msrb.mxu0 %v2162_v6  ;;  %365 = vmatpush.msrb.mxu1 %v2164_v7 }
  0x34   :  { %405 = vmatpush.msrb.mxu3 %v2168_v8  ;;  %179 = vmatpush.msra.mxu2 %v2336_v63 }
  0x35   :  { %346 = vmatpush.msrb.mxu0 %v2171_v9  ;;  %366 = vmatpush.msrb.mxu1 %v2173_v10 }
  0x36   :  { %406 = vmatpush.msrb.mxu3 %v2177_v11  ;;  %180 = vmatpush.msra.mxu2 %v2342_v0 }
  0x37   :  { %347 = vmatpush.msrb.mxu0 %v2180_v12  ;;  %181 = vmatmul.f32.vlgmr.msra.gmra.mxu2 %v2116_v60  ;;  %v3230_v60 = vld [vmem:[#allocation16_spill] sm:$0xff] }
  0x38   :  { %367 = vmatpush.msrb.mxu1 %v2182_v13  ;;  %383 = vmatpush.msrb.mxu2 %v2193_v17 }
  0x39   :  { %407 = vmatpush.msrb.mxu3 %v2186_v14  ;;  %348 = vmatpush.msrb.mxu0 %v2189_v15 }
  0x3a   :  { %368 = vmatpush.msrb.mxu1 %v2191_v16  ;;  %384 = vmatpush.msrb.mxu2 %v2199_v19 }
  0x3b   :  { %408 = vmatpush.msrb.mxu3 %v2197_v18  ;;  %349 = vmatpush.msrb.mxu0 %v2202_v20 }
  0x3c   :  { %369 = vmatpush.msrb.mxu1 %v2204_v21  ;;  %385 = vmatpush.msrb.mxu2 %v2211_v23 }
  0x3d   :  { %409 = vmatpush.msrb.mxu3 %v2209_v22  ;;  %350 = vmatpush.msrb.mxu0 %v2214_v24 }
  0x3e   :  { %370 = vmatpush.msrb.mxu1 %v2216_v25  ;;  %386 = vmatpush.msrb.mxu2 %v2223_v27 }
  0x3f   :  { %410 = vmatpush.msrb.mxu3 %v2221_v26  ;;  %351 = vmatpush.msrb.mxu0 %v2226_v28 }
  0x40   :  { %371 = vmatpush.msrb.mxu1 %v2228_v29  ;;  %387 = vmatpush.msrb.mxu2 %v2235_v31 }
  0x41   :  { %411 = vmatpush.msrb.mxu3 %v2233_v30  ;;  %352 = vmatpush.msrb.mxu0 %v2238_v32 }
  0x42   :  { %372 = vmatpush.msrb.mxu1 %v2240_v33  ;;  %388 = vmatpush.msrb.mxu2 %v2247_v35 }
  0x43   :  { %412 = vmatpush.msrb.mxu3 %v2245_v34  ;;  %353 = vmatpush.msrb.mxu0 %v2250_v36 }
  0x44   :  { %373 = vmatpush.msrb.mxu1 %v2252_v37  ;;  %389 = vmatpush.msrb.mxu2 %v2259_v39 }
  0x45   :  { %413 = vmatpush.msrb.mxu3 %v2257_v38  ;;  %354 = vmatpush.msrb.mxu0 %v2262_v40 }
  0x46   :  { %374 = vmatpush.msrb.mxu1 %v2264_v41  ;;  %390 = vmatpush.msrb.mxu2 %v2271_v43 }
  0x47   :  { %414 = vmatpush.msrb.mxu3 %v2269_v42  ;;  %355 = vmatpush.msrb.mxu0 %v2274_v44 }
  0x48   :  { %375 = vmatpush.msrb.mxu1 %v2276_v45  ;;  %391 = vmatpush.msrb.mxu2 %v2283_v47 }
  0x49   :  { %415 = vmatpush.msrb.mxu3 %v2281_v46  ;;  %356 = vmatpush.msrb.mxu0 %v2286_v48 }
  0x4a   :  { %376 = vmatpush.msrb.mxu1 %v2288_v49  ;;  %392 = vmatpush.msrb.mxu2 %v2295_v51 }
  0x4b   :  { %416 = vmatpush.msrb.mxu3 %v2293_v50  ;;  %357 = vmatpush.msrb.mxu0 %v2298_v52 }
  0x4c   :  { %377 = vmatpush.msrb.mxu1 %v2300_v53  ;;  %393 = vmatpush.msrb.mxu2 %v2307_v55 }
  0x4d   :  { %417 = vmatpush.msrb.mxu3 %v2305_v54  ;;  %358 = vmatpush.msrb.mxu0 %v2310_v56 }
  0x4e   :  { %378 = vmatpush.msrb.mxu1 %v2312_v57  ;;  %394 = vmatpush.msrb.mxu2 %v2323_v59 }
  0x4f   :  { %418 = vmatpush.msrb.mxu3 %v2317_v58  ;;  %562 = vmatpush.msra.mxu0 %v3230_v60 }
  0x50   :  { %582 = vmatpush.msra.mxu1 %v2149_v1  ;;  %395 = vmatpush.msrb.mxu2 %v2326_v61  ;;  %v57_v1 = vld [vmem:[#allocation4] sm:$0xff] }
  0x51   :  { %622 = vmatpush.msra.mxu3 %v2151_v2  ;;  %563 = vmatpush.msra.mxu0 %v2155_v3  ;;  %v58_v2 = vld [vmem:[#allocation4 + $0x8] sm:$0xff] }
  0x52   :  { %583 = vmatpush.msra.mxu1 %v2157_v4  ;;  %396 = vmatpush.msrb.mxu2 %v2330_v62 }
  0x53   :  { %623 = vmatpush.msra.mxu3 %v2159_v5  ;;  %564 = vmatpush.msra.mxu0 %v2162_v6 }
  0x54   :  { %584 = vmatpush.msra.mxu1 %v2164_v7  ;;  %397 = vmatpush.msrb.mxu2 %v2336_v63 }
  0x55   :  { %624 = vmatpush.msra.mxu3 %v2168_v8  ;;  %565 = vmatpush.msra.mxu0 %v2171_v9  ;;  %v60_v9 = vld [vmem:[#allocation4 + $0x18] sm:$0xff] }
  0x56   :  { %585 = vmatpush.msra.mxu1 %v2173_v10  ;;  %398 = vmatpush.msrb.mxu2 %v2342_v0 }
  0x57   :  { %625 = vmatpush.msra.mxu3 %v2177_v11  ;;  %566 = vmatpush.msra.mxu0 %v2180_v12 }
  0x58   :  { %602 = vmatpush.msra.mxu2 %v2193_v17  ;;  %586 = vmatpush.msra.mxu1 %v2182_v13 }
  0x59   :  { %626 = vmatpush.msra.mxu3 %v2186_v14  ;;  %567 = vmatpush.msra.mxu0 %v2189_v15 }
  0x5a   :  { %603 = vmatpush.msra.mxu2 %v2199_v19  ;;  %587 = vmatpush.msra.mxu1 %v2191_v16 }
  0x5b   :  { %627 = vmatpush.msra.mxu3 %v2197_v18  ;;  %568 = vmatpush.msra.mxu0 %v2202_v20 }
  0x5c   :  { %604 = vmatpush.msra.mxu2 %v2211_v23  ;;  %588 = vmatpush.msra.mxu1 %v2204_v21 }
  0x5d   :  { %628 = vmatpush.msra.mxu3 %v2209_v22  ;;  %569 = vmatpush.msra.mxu0 %v2214_v24 }
  0x5e   :  { %605 = vmatpush.msra.mxu2 %v2223_v27  ;;  %589 = vmatpush.msra.mxu1 %v2216_v25 }
  0x5f   :  { %629 = vmatpush.msra.mxu3 %v2221_v26  ;;  %570 = vmatpush.msra.mxu0 %v2226_v28 }
  0x60   :  { %606 = vmatpush.msra.mxu2 %v2235_v31  ;;  %590 = vmatpush.msra.mxu1 %v2228_v29 }
  0x61   :  { %630 = vmatpush.msra.mxu3 %v2233_v30  ;;  %571 = vmatpush.msra.mxu0 %v2238_v32 }
  0x62   :  { %607 = vmatpush.msra.mxu2 %v2247_v35  ;;  %591 = vmatpush.msra.mxu1 %v2240_v33 }
  0x63   :  { %631 = vmatpush.msra.mxu3 %v2245_v34  ;;  %572 = vmatpush.msra.mxu0 %v2250_v36 }
  0x64   :  { %608 = vmatpush.msra.mxu2 %v2259_v39  ;;  %592 = vmatpush.msra.mxu1 %v2252_v37 }
  0x65   :  { %632 = vmatpush.msra.mxu3 %v2257_v38  ;;  %573 = vmatpush.msra.mxu0 %v2262_v40 }
  0x66   :  { %609 = vmatpush.msra.mxu2 %v2271_v43  ;;  %593 = vmatpush.msra.mxu1 %v2264_v41 }
  0x67   :  { %633 = vmatpush.msra.mxu3 %v2269_v42  ;;  %574 = vmatpush.msra.mxu0 %v2274_v44 }
  0x68   :  { %610 = vmatpush.msra.mxu2 %v2283_v47  ;;  %594 = vmatpush.msra.mxu1 %v2276_v45 }
  0x69   :  { %634 = vmatpush.msra.mxu3 %v2281_v46  ;;  %575 = vmatpush.msra.mxu0 %v2286_v48 }
  0x6a   :  { %611 = vmatpush.msra.mxu2 %v2295_v51  ;;  %595 = vmatpush.msra.mxu1 %v2288_v49 }
  0x6b   :  { %635 = vmatpush.msra.mxu3 %v2293_v50  ;;  %576 = vmatpush.msra.mxu0 %v2298_v52 }
  0x6c   :  { %612 = vmatpush.msra.mxu2 %v2307_v55  ;;  %596 = vmatpush.msra.mxu1 %v2300_v53 }
  0x6d   :  { %636 = vmatpush.msra.mxu3 %v2305_v54  ;;  %577 = vmatpush.msra.mxu0 %v2310_v56 }
  0x6e   :  { %613 = vmatpush.msra.mxu2 %v2323_v59  ;;  %597 = vmatpush.msra.mxu1 %v2312_v57  ;;  %v275_v57 = vld [vmem:[#allocation4 + $0x20] sm:$0xff] }
  0x6f   :  { %637 = vmatpush.msra.mxu3 %v2317_v58  ;;  %v276_v58 = vld [vmem:[#allocation4 + $0x28] sm:$0xff] }
  0x70   :  { %614 = vmatpush.msra.mxu2 %v2326_v61 }
  0x72   :  { %615 = vmatpush.msra.mxu2 %v2330_v62 }
  0x74   :  { %616 = vmatpush.msra.mxu2 %v2336_v63 }
  0x76   :  { %617 = vmatpush.msra.mxu2 %v2342_v0  ;;  %v59_v0 = vld [vmem:[#allocation4 + $0x10] sm:$0xff] }
  0xaa   :  { %v142_v3 = vpop.f32.mrf.mxu0 }
  0xab   :  { %v205_v4 = vadd.f32 %v142_v3, %v57_v1  ;;  %v162_v5 = vpop.f32.mrf.mxu1 }
  0xac   :  { %v206_v6 = vadd.f32 %v162_v5, %v58_v2  ;;  %v278_v2 = vld [vmem:[#allocation4 + $0x38] sm:$0xff] }
  0xad   :  { %v1846_v7 = vmul.f32 -1.442695, %v205_v4 }
  0xae   :  { %v1847_v8 = vmul.f32 -1.442695, %v206_v6 }
  0xaf   :  { %1880 = vpow2.f32 %v1846_v7 }
  0xb0   :  { %1882 = vpow2.f32 %v1847_v8 }
  0xb1   :  { %v202_v10 = vpop.f32.mrf.mxu3 }
  0xb2   :  { %v208_v11 = vadd.f32 %v202_v10, %v60_v9  ;;  %v277_v10 = vld [vmem:[#allocation4 + $0x30] sm:$0xff] }
  0xb4   :  { %v1848_v12 = vmul.f32 -1.442695, %v208_v11 }
  0xb5   :  { %v1881_v13 = vpop.eup %1880 }
  0xb6   :  { %v1883_v14 = vpop.eup %1882  ;;  %v212_v15 = vadd.f32 1.0, %v1881_v13  ;;  %1884 = vpow2.f32 %v1848_v12 }
  0xb7   :  { %v231_v16 = vadd.f32 1.0, %v1883_v14 }
  0xb8   :  { %1886 = vrcp.f32 %v212_v15  ;;  %v224_v27 = vand.u32 2147483648, %v212_v15  ;;  %v222_v30 = vand.u32 2147483647, %v212_v15  ;;  %vm218_vm2 = vweird.f32 %v212_v15 }
  0xb9   :  { %1888 = vrcp.f32 %v231_v16  ;;  %v243_v28 = vand.u32 2147483648, %v231_v16  ;;  %v241_v32 = vand.u32 2147483647, %v231_v16  ;;  %vm237_vm3 = vweird.f32 %v231_v16 }
  0xba   :  { %v182_v17 = vpop.f32.mrf.mxu2  ;;  %v225_v37 = vor.u32 1.1754944e-38, %v224_v27  ;;  %vm223_vm5 = vcmp.eq.f32.partialorder %v222_v30, 8.507059e+37 }
  0xbb   :  { %v207_v19 = vadd.f32 %v182_v17, %v59_v0  ;;  %v244_v39 = vor.u32 1.1754944e-38, %v243_v28  ;;  %vm242_vm7 = vcmp.eq.f32.partialorder %v241_v32, 8.507059e+37 }
  0xbc   :  { %v1885_v18 = vpop.eup %1884 }
  0xbd   :  { %v251_v20 = vadd.f32 1.0, %v1885_v18 }
  0xbe   :  { %v1887_v21 = vpop.eup %1886 }
  0xbf   :  { %v1889_v22 = vpop.eup %1888  ;;  %v214_v23 = vmul.f32 %v1887_v21, %v212_v15  ;;  %1890 = vrcp.f32 %v251_v20  ;;  %vm219_vm0 = vweird.f32 %v1887_v21  ;;  %v263_v50 = vand.u32 2147483648, %v251_v20 }
  0xc0   :  { %v233_v24 = vmul.f32 %v1889_v22, %v231_v16  ;;  %1892 = vtanh.f32 %v207_v19  ;;  %vm238_vm1 = vweird.f32 %v1889_v22  ;;  %vm220_vm4 = vmor %vm218_vm2, %vm219_vm0  ;;  %vm257_vm9 = vweird.f32 %v251_v20 }
  0xc1   :  { %v215_v25 = vsub.f32 1.0, %v214_v23  ;;  %vm239_vm6 = vmor %vm237_vm3, %vm238_vm1  ;;  %v261_v51 = vand.u32 2147483647, %v251_v20  ;;  %v264_v53 = vor.u32 1.1754944e-38, %v263_v50 }
  0xc2   :  { %v234_v26 = vsub.f32 1.0, %v233_v24 }
  0xc3   :  { %v216_v29 = vmul.f32 %v1887_v21, %v215_v25  ;;  %vm262_vm11 = vcmp.eq.f32.partialorder %v261_v51, 8.507059e+37  ;;  %v2490_v51 = vld [vmem:[#allocation7 + $0x1e0] sm:$0xff] }
  0xc4   :  { %v235_v31 = vmul.f32 %v1889_v22, %v234_v26 }
  0xc5   :  { %v1891_v33 = vpop.eup %1890  ;;  %v217_v34 = vadd.f32 %v1887_v21, %v216_v29 }
  0xc6   :  { %v1893_v35 = vpop.eup %1892  ;;  %v253_v36 = vmul.f32 %v1891_v33, %v251_v20  ;;  %v236_v38 = vadd.f32 %v1889_v22, %v235_v31  ;;  %vm258_vm8 = vweird.f32 %v1891_v33 }
  0xc7   :  { %v221_v40 = vsel %vm220_vm4, %v1887_v21, %v217_v34  ;;  %vm259_vm10 = vmor %vm257_vm9, %vm258_vm8 }
  0xc8   :  { %v254_v41 = vsub.f32 1.0, %v253_v36  ;;  %v226_v42 = vsel %vm223_vm5, %v225_v37, %v221_v40  ;;  %v240_v43 = vsel %vm239_vm6, %v1889_v22, %v236_v38 }
  0xc9   :  { %v245_v44 = vsel %vm242_vm7, %v244_v39, %v240_v43  ;;  %v268_v45 = vmul.f32 %v1893_v35, %v226_v42 }
  0xca   :  { %v255_v46 = vmul.f32 %v1891_v33, %v254_v41  ;;  %v267_v47 = vmul.f32 0.0, %v245_v44 }
  0xcc   :  { %v2467_v48 = vadd.f32 %v268_v45, %v267_v47  ;;  %v256_v49 = vadd.f32 %v1891_v33, %v255_v46 }
  0xce   :  { %1894 = vtanh.f32 %v2467_v48  ;;  %v260_v52 = vsel %vm259_vm10, %v1891_v33, %v256_v49 }
  0xcf   :  { %v265_v55 = vsel %vm262_vm11, %v264_v53, %v260_v52  ;;  %v2492_v52 = vld [vmem:[#allocation7 + $0x1e8] sm:$0xff]  ;;  %v2494_v53 = vld [vmem:[#allocation7 + $0x1f0] sm:$0xff] }
  0xd0   :  { %3233 = vst [vmem:[#allocation18_spill] sm:$0xff] %v2492_v52 }
  0xd1   :  { %3234 = vst [vmem:[#allocation19_spill] sm:$0xff] %v2494_v53 }
  0xd4   :  { %v1895_v54 = vpop.eup %1894 }
  0xd5   :  { %v2470_v56 = vmul.f32 %v1895_v54, %v265_v55  ;;  %v2498_v54 = vld [vmem:[#allocation7 + $0x1f8] sm:$0xff]  ;;  %v2502_v55 = vld [vmem:[#allocation7 + $0x1c0] sm:$0xff] }
  0xd6   :  { %3235 = vst [vmem:[#allocation20_spill] sm:$0xff] %v2502_v55 }
  0xd7   :  { %3231 = vst [vmem:[#allocation16_spill] sm:$0xff] %v2470_v56  ;;  %359 = vmatmul.f32.vlgmr.msrb.gmra.mxu0 %v2470_v56  ;;  %379 = vmatmul.f32.vlgmr.msrb.gmra.mxu1 %v2470_v56 }
  0xd8   :  { %272 = vst [vmem:[#allocation9] sm:$0xff] %v2470_v56  ;;  %399 = vmatmul.f32.vlgmr.msrb.gmra.mxu2 %v2470_v56  ;;  %419 = vmatmul.f32.vlgmr.msrb.gmra.mxu3 %v2470_v56  ;;  %v2662_v56 = vld [vmem:[#allocation7 + $0x38] sm:$0xff] }
  0xd9   :  { %781 = vmatpush.msrb.mxu0 %v2490_v51  ;;  %801 = vmatpush.msrb.mxu1 %v2492_v52 }
  0xda   :  { %821 = vmatpush.msrb.mxu2 %v2494_v53  ;;  %841 = vmatpush.msrb.mxu3 %v2498_v54 }
  0xdb   :  { %782 = vmatpush.msrb.mxu0 %v2502_v55 }
 0x154   :  { %v360_v59 = vpop.f32.mrf.mxu0  ;;  %v380_v61 = vpop.f32.mrf.mxu1 }
 0x155   :  { %v423_v62 = vadd.f32 %v360_v59, %v275_v57  ;;  %v424_v63 = vadd.f32 %v380_v61, %v276_v58  ;;  %v2504_v57 = vld [vmem:[#allocation7 + $0x1c8] sm:$0xff]  ;;  %v2506_v58 = vld [vmem:[#allocation7 + $0x1d0] sm:$0xff]  ;;  %v2510_v59 = vld [vmem:[#allocation7 + $0x1d8] sm:$0xff] }
 0x156   :  { %3236 = vst [vmem:[#allocation21_spill] sm:$0xff] %v2504_v57  ;;  %802 = vmatpush.msrb.mxu1 %v2504_v57  ;;  %822 = vmatpush.msrb.mxu2 %v2506_v58  ;;  %v2514_v61 = vld [vmem:[#allocation7 + $0x1a0] sm:$0xff] }
 0x157   :  { %v1849_v60 = vmul.f32 -1.442695, %v423_v62  ;;  %v1850_v1 = vmul.f32 -1.442695, %v424_v63  ;;  %842 = vmatpush.msrb.mxu3 %v2510_v59  ;;  %v2516_v62 = vld [vmem:[#allocation7 + $0x1a8] sm:$0xff]  ;;  %v2518_v63 = vld [vmem:[#allocation7 + $0x1b0] sm:$0xff]  ;;  %783 = vmatpush.msrb.mxu0 %v2514_v61 }
 0x158   :  { %803 = vmatpush.msrb.mxu1 %v2516_v62  ;;  %823 = vmatpush.msrb.mxu2 %v2518_v63 }
 0x159   :  { %1896 = vpow2.f32 %v1849_v60  ;;  %v2522_v60 = vld [vmem:[#allocation7 + $0x1b8] sm:$0xff] }
 0x15a   :  { %1898 = vpow2.f32 %v1850_v1  ;;  %3237 = vst [vmem:[#allocation22_spill] sm:$0xff] %v2522_v60  ;;  %843 = vmatpush.msrb.mxu3 %v2522_v60  ;;  %v2526_v1 = vld [vmem:[#allocation7 + $0x180] sm:$0xff] }
 0x15b   :  { %v420_v3 = vpop.f32.mrf.mxu3  ;;  %v400_v11 = vpop.f32.mrf.mxu2  ;;  %3238 = vst [vmem:[#allocation23_spill] sm:$0xff] %v2526_v1  ;;  %784 = vmatpush.msrb.mxu0 %v2526_v1 }
 0x15c   :  { %v426_v4 = vadd.f32 %v420_v3, %v278_v2  ;;  %v425_v15 = vadd.f32 %v400_v11, %v277_v10  ;;  %v2528_v2 = vld [vmem:[#allocation7 + $0x188] sm:$0xff]  ;;  %v2530_v3 = vld [vmem:[#allocation7 + $0x190] sm:$0xff] }
 0x15d   :  { %3239 = vst [vmem:[#allocation24_spill] sm:$0xff] %v2528_v2  ;;  %804 = vmatpush.msrb.mxu1 %v2528_v2  ;;  %824 = vmatpush.msrb.mxu2 %v2530_v3  ;;  %v2552_v10 = vld [vmem:[#allocation7 + $0x148] sm:$0xff]  ;;  %v2554_v11 = vld [vmem:[#allocation7 + $0x150] sm:$0xff] }
 0x15e   :  { %v1851_v5 = vmul.f32 -1.442695, %v426_v4  ;;  %3240 = vst [vmem:[#allocation25_spill] sm:$0xff] %v2530_v3  ;;  %v2534_v4 = vld [vmem:[#allocation7 + $0x198] sm:$0xff] }
 0x15f   :  { %v1897_v6 = vpop.eup %1896  ;;  %844 = vmatpush.msrb.mxu3 %v2534_v4  ;;  %3242 = vst [vmem:[#allocation27_spill] sm:$0xff] %v2554_v11 }
 0x160   :  { %v1899_v7 = vpop.eup %1898  ;;  %v430_v8 = vadd.f32 1.0, %v1897_v6  ;;  %1900 = vpow2.f32 %v1851_v5  ;;  %v2538_v5 = vld [vmem:[#allocation7 + $0x160] sm:$0xff]  ;;  %v2540_v6 = vld [vmem:[#allocation7 + $0x168] sm:$0xff] }
 0x161   :  { %v449_v9 = vadd.f32 1.0, %v1899_v7  ;;  %v2542_v7 = vld [vmem:[#allocation7 + $0x170] sm:$0xff]  ;;  %785 = vmatpush.msrb.mxu0 %v2538_v5  ;;  %805 = vmatpush.msrb.mxu1 %v2540_v6 }
 0x162   :  { %1902 = vrcp.f32 %v430_v8  ;;  %v442_v20 = vand.u32 2147483648, %v430_v8  ;;  %v440_v23 = vand.u32 2147483647, %v430_v8  ;;  %vm436_vm14 = vweird.f32 %v430_v8  ;;  %825 = vmatpush.msrb.mxu2 %v2542_v7 }
 0x163   :  { %1904 = vrcp.f32 %v449_v9  ;;  %v461_v21 = vand.u32 2147483648, %v449_v9  ;;  %v459_v25 = vand.u32 2147483647, %v449_v9  ;;  %vm455_vm15 = vweird.f32 %v449_v9  ;;  %806 = vmatpush.msrb.mxu1 %v2552_v10 }
 0x164   :  { %v443_v28 = vor.u32 1.1754944e-38, %v442_v20  ;;  %vm441_vm2 = vcmp.eq.f32.partialorder %v440_v23, 8.507059e+37  ;;  %826 = vmatpush.msrb.mxu2 %v2554_v11  ;;  %v495_v20 = vld [vmem:[#allocation4 + $0x48] sm:$0xff] }
 0x165   :  { %v462_v31 = vor.u32 1.1754944e-38, %v461_v21  ;;  %vm460_vm3 = vcmp.eq.f32.partialorder %v459_v25, 8.507059e+37  ;;  %v2582_v21 = vld [vmem:[#allocation7 + $0x118] sm:$0xff]  ;;  %v2588_v23 = vld [vmem:[#allocation7 + $0xe8] sm:$0xff] }
 0x166   :  { %v1901_v12 = vpop.eup %1900  ;;  %v2594_v25 = vld [vmem:[#allocation7 + $0xf8] sm:$0xff] }
 0x167   :  { %v469_v13 = vadd.f32 1.0, %v1901_v12  ;;  %v2558_v12 = vld [vmem:[#allocation7 + $0x158] sm:$0xff] }
 0x168   :  { %v1903_v14 = vpop.eup %1902 }
 0x169   :  { %v1905_v16 = vpop.eup %1904  ;;  %v432_v0 = vmul.f32 %v1903_v14, %v430_v8  ;;  %1906 = vrcp.f32 %v469_v13  ;;  %vm437_vm12 = vweird.f32 %v1903_v14  ;;  %v481_v43 = vand.u32 2147483648, %v469_v13  ;;  %v2546_v8 = vld [vmem:[#allocation7 + $0x178] sm:$0xff] }
 0x16a   :  { %v451_v17 = vmul.f32 %v1905_v16, %v449_v9  ;;  %1908 = vtanh.f32 %v425_v15  ;;  %vm456_vm13 = vweird.f32 %v1905_v16  ;;  %vm438_vm0 = vmor %vm436_vm14, %vm437_vm12  ;;  %vm475_vm5 = vweird.f32 %v469_v13  ;;  %3241 = vst [vmem:[#allocation26_spill] sm:$0xff] %v2546_v8  ;;  %845 = vmatpush.msrb.mxu3 %v2546_v8  ;;  %v2550_v9 = vld [vmem:[#allocation7 + $0x140] sm:$0xff]  ;;  %v2566_v15 = vld [vmem:[#allocation7 + $0x130] sm:$0xff] }
 0x16b   :  { %v433_v18 = vsub.f32 1.0, %v432_v0  ;;  %vm457_vm1 = vmor %vm455_vm15, %vm456_vm13  ;;  %v479_v44 = vand.u32 2147483647, %v469_v13  ;;  %v482_v46 = vor.u32 1.1754944e-38, %v481_v43  ;;  %786 = vmatpush.msrb.mxu0 %v2550_v9  ;;  %3244 = vst [vmem:[#allocation29_spill] sm:$0xff] %v2566_v15  ;;  %827 = vmatpush.msrb.mxu2 %v2566_v15  ;;  %v2574_v0 = vld [vmem:[#allocation7 + $0x100] sm:$0xff] }
 0x16c   :  { %v452_v19 = vsub.f32 1.0, %v451_v17  ;;  %846 = vmatpush.msrb.mxu3 %v2558_v12  ;;  %v2576_v17 = vld [vmem:[#allocation7 + $0x108] sm:$0xff] }
 0x16d   :  { %v434_v22 = vmul.f32 %v1903_v14, %v433_v18  ;;  %vm480_vm7 = vcmp.eq.f32.partialorder %v479_v44, 8.507059e+37  ;;  %v2578_v18 = vld [vmem:[#allocation7 + $0x110] sm:$0xff]  ;;  %v2624_v43 = vld [vmem:[#allocation7 + $0x88] sm:$0xff] }
 0x16e   :  { %v453_v24 = vmul.f32 %v1905_v16, %v452_v19  ;;  %v494_v19 = vld [vmem:[#allocation4 + $0x40] sm:$0xff]  ;;  %828 = vmatpush.msrb.mxu2 %v2578_v18  ;;  %v2626_v44 = vld [vmem:[#allocation7 + $0x90] sm:$0xff] }
 0x16f   :  { %v1907_v26 = vpop.eup %1906  ;;  %v435_v27 = vadd.f32 %v1903_v14, %v434_v22  ;;  %v2586_v22 = vld [vmem:[#allocation7 + $0xe0] sm:$0xff] }
 0x170   :  { %v454_v29 = vadd.f32 %v1905_v16, %v453_v24  ;;  %v471_v30 = vmul.f32 %v1907_v26, %v469_v13  ;;  %v1909_v33 = vpop.eup %1908  ;;  %vm476_vm4 = vweird.f32 %v1907_v26  ;;  %v2562_v13 = vld [vmem:[#allocation7 + $0x120] sm:$0xff]  ;;  %v2590_v24 = vld [vmem:[#allocation7 + $0xf0] sm:$0xff] }
 0x171   :  { %v439_v32 = vsel %vm438_vm0, %v1903_v14, %v435_v27  ;;  %vm477_vm6 = vmor %vm475_vm5, %vm476_vm4  ;;  %v2564_v14 = vld [vmem:[#allocation7 + $0x128] sm:$0xff]  ;;  %787 = vmatpush.msrb.mxu0 %v2562_v13  ;;  %829 = vmatpush.msrb.mxu2 %v2590_v24 }
 0x172   :  { %v444_v34 = vsel %vm441_vm2, %v443_v28, %v439_v32  ;;  %v458_v35 = vsel %vm457_vm1, %v1905_v16, %v454_v29  ;;  %v472_v36 = vsub.f32 1.0, %v471_v30  ;;  %3243 = vst [vmem:[#allocation28_spill] sm:$0xff] %v2564_v14  ;;  %807 = vmatpush.msrb.mxu1 %v2564_v14  ;;  %v2570_v16 = vld [vmem:[#allocation7 + $0x138] sm:$0xff]  ;;  %v2598_v28 = vld [vmem:[#allocation7 + $0xc0] sm:$0xff]  ;;  %v2600_v29 = vld [vmem:[#allocation7 + $0xc8] sm:$0xff] }
 0x173   :  { %v463_v37 = vsel %vm460_vm3, %v462_v31, %v458_v35  ;;  %v486_v38 = vmul.f32 %v1909_v33, %v444_v34  ;;  %3245 = vst [vmem:[#allocation30_spill] sm:$0xff] %v2570_v16  ;;  %847 = vmatpush.msrb.mxu3 %v2570_v16  ;;  %788 = vmatpush.msrb.mxu0 %v2574_v0  ;;  %v2602_v30 = vld [vmem:[#allocation7 + $0xd0] sm:$0xff]  ;;  %v2606_v33 = vld [vmem:[#allocation7 + $0xd8] sm:$0xff]  ;;  %v2610_v34 = vld [vmem:[#allocation7 + $0xa0] sm:$0xff] }
 0x174   :  { %v485_v39 = vmul.f32 %v463_v37, %v2467_v48  ;;  %v473_v40 = vmul.f32 %v1907_v26, %v472_v36  ;;  %808 = vmatpush.msrb.mxu1 %v2576_v17  ;;  %830 = vmatpush.msrb.mxu2 %v2602_v30  ;;  %v2612_v35 = vld [vmem:[#allocation7 + $0xa8] sm:$0xff]  ;;  %v2614_v36 = vld [vmem:[#allocation7 + $0xb0] sm:$0xff] }
 0x175   :  { %848 = vmatpush.msrb.mxu3 %v2582_v21  ;;  %789 = vmatpush.msrb.mxu0 %v2586_v22  ;;  %v2656_v48 = vld [vmem:[#allocation7 + $0x28] sm:$0xff] }
 0x176   :  { %v2478_v41 = vadd.f32 %v486_v38, %v485_v39  ;;  %v474_v42 = vadd.f32 %v1907_v26, %v473_v40  ;;  %809 = vmatpush.msrb.mxu1 %v2588_v23  ;;  %v497_v39 = vld [vmem:[#allocation4 + $0x58] sm:$0xff]  ;;  %831 = vmatpush.msrb.mxu2 %v2614_v36 }
 0x177   :  { %849 = vmatpush.msrb.mxu3 %v2594_v25  ;;  %790 = vmatpush.msrb.mxu0 %v2598_v28  ;;  %v2618_v40 = vld [vmem:[#allocation7 + $0xb8] sm:$0xff] }
 0x178   :  { %1910 = vtanh.f32 %v2478_v41  ;;  %v478_v45 = vsel %vm477_vm6, %v1907_v26, %v474_v42  ;;  %810 = vmatpush.msrb.mxu1 %v2600_v29  ;;  %v2622_v42 = vld [vmem:[#allocation7 + $0x80] sm:$0xff]  ;;  %832 = vmatpush.msrb.mxu2 %v2626_v44 }
 0x179   :  { %v483_v49 = vsel %vm480_vm7, %v482_v46, %v478_v45  ;;  %850 = vmatpush.msrb.mxu3 %v2606_v33  ;;  %791 = vmatpush.msrb.mxu0 %v2610_v34  ;;  %v2630_v45 = vld [vmem:[#allocation7 + $0x98] sm:$0xff]  ;;  %v2632_v46 = vld [vmem:[#allocation7 + $0x60] sm:$0xff] }
 0x17a   :  { %811 = vmatpush.msrb.mxu1 %v2612_v35  ;;  %3246 = vst [vmem:[#allocation31_spill] sm:$0xff] %v2632_v46 }
 0x17b   :  { %851 = vmatpush.msrb.mxu3 %v2618_v40  ;;  %792 = vmatpush.msrb.mxu0 %v2622_v42 }
 0x17c   :  { %812 = vmatpush.msrb.mxu1 %v2624_v43 }
 0x17d   :  { %852 = vmatpush.msrb.mxu3 %v2630_v45  ;;  %793 = vmatpush.msrb.mxu0 %v2632_v46 }
 0x17e   :  { %v1911_v47 = vpop.eup %1910 }
 0x17f   :  { %v2481_v50 = vmul.f32 %v1911_v47, %v483_v49  ;;  %v2634_v47 = vld [vmem:[#allocation7 + $0x68] sm:$0xff]  ;;  %v2638_v49 = vld [vmem:[#allocation7 + $0x70] sm:$0xff] }
 0x180   :  { %3247 = vst [vmem:[#allocation32_spill] sm:$0xff] %v2634_v47  ;;  %813 = vmatpush.msrb.mxu1 %v2634_v47  ;;  %833 = vmatpush.msrb.mxu2 %v2638_v49 }
 0x181   :  { %3232 = vst [vmem:[#allocation17_spill] sm:$0xff] %v2481_v50  ;;  %578 = vmatmul.f32.vlgmr.msra.gmra.mxu0 %v2481_v50  ;;  %598 = vmatmul.f32.vlgmr.msra.gmra.mxu1 %v2481_v50 }
 0x182   :  { %491 = vst [vmem:[#allocation9 + $0x8] sm:$0xff] %v2481_v50  ;;  %618 = vmatmul.f32.vlgmr.msra.gmra.mxu2 %v2481_v50  ;;  %638 = vmatmul.f32.vlgmr.msra.gmra.mxu3 %v2481_v50  ;;  %v2660_v50 = vld [vmem:[#allocation7 + $0x30] sm:$0xff] }
 0x183   :  { %3248 = vst [vmem:[#allocation33_spill] sm:$0xff] %v2638_v49 }
 0x1fe   :  { %v579_v26 = vpop.f32.mrf.mxu0  ;;  %v599_v27 = vpop.f32.mrf.mxu1 }
 0x1ff   :  { %v642_v31 = vadd.f32 %v579_v26, %v494_v19  ;;  %v643_v32 = vadd.f32 %v599_v27, %v495_v20  ;;  %v2640_v19 = vld [vmem:[#allocation7 + $0x78] sm:$0xff]  ;;  %v2642_v20 = vld [vmem:[#allocation7 + $0x40] sm:$0xff]  ;;  %v2646_v27 = vld [vmem:[#allocation7 + $0x48] sm:$0xff] }
 0x200   :  { %3249 = vst [vmem:[#allocation34_spill] sm:$0xff] %v2640_v19  ;;  %853 = vmatpush.msrb.mxu3 %v2640_v19  ;;  %794 = vmatpush.msrb.mxu0 %v2642_v20 }
 0x201   :  { %v1852_v37 = vmul.f32 -1.442695, %v642_v31  ;;  %v1853_v38 = vmul.f32 -1.442695, %v643_v32  ;;  %3250 = vst [vmem:[#allocation35_spill] sm:$0xff] %v2642_v20  ;;  %v2648_v31 = vld [vmem:[#allocation7 + $0x50] sm:$0xff]  ;;  %814 = vmatpush.msrb.mxu1 %v2646_v27 }
 0x202   :  { %3251 = vst [vmem:[#allocation36_spill] sm:$0xff] %v2646_v27  ;;  %v2650_v32 = vld [vmem:[#allocation7 + $0x58] sm:$0xff]  ;;  %834 = vmatpush.msrb.mxu2 %v2648_v31  ;;  %v2672_v20 = vld [vmem:[#allocation7 + $0x10] sm:$0xff] }
 0x203   :  { %1912 = vpow2.f32 %v1852_v37  ;;  %854 = vmatpush.msrb.mxu3 %v2650_v32  ;;  %815 = vmatpush.msrb.mxu1 %v2656_v48  ;;  %v2674_v27 = vld [vmem:[#allocation7 + $0x18] sm:$0xff] }
 0x204   :  { %1914 = vpow2.f32 %v1853_v38  ;;  %v2654_v38 = vld [vmem:[#allocation7 + $0x20] sm:$0xff]  ;;  %3252 = vst [vmem:[#allocation37_spill] sm:$0xff] %v2674_v27  ;;  %835 = vmatpush.msrb.mxu2 %v2660_v50 }
 0x205   :  { %v639_v26 = vpop.f32.mrf.mxu3  ;;  %795 = vmatpush.msrb.mxu0 %v2654_v38  ;;  %855 = vmatpush.msrb.mxu3 %v2662_v56 }
 0x206   :  { %v645_v37 = vadd.f32 %v639_v26, %v497_v39  ;;  %v2666_v39 = vld [vmem:[#allocation7] sm:$0xff]  ;;  %v2668_v26 = vld [vmem:[#allocation7 + $0x8] sm:$0xff]  ;;  %836 = vmatpush.msrb.mxu2 %v2672_v20 }
 0x207   :  { %796 = vmatpush.msrb.mxu0 %v2666_v39  ;;  %816 = vmatpush.msrb.mxu1 %v2668_v26 }
 0x208   :  { %v1854_v47 = vmul.f32 -1.442695, %v645_v37  ;;  %856 = vmatpush.msrb.mxu3 %v2674_v27  ;;  %1040 = vmatpush.msra.mxu2 %v2494_v53 }
 0x209   :  { %v1913_v19 = vpop.eup %1912  ;;  %1000 = vmatpush.msra.mxu0 %v2490_v51  ;;  %1020 = vmatpush.msra.mxu1 %v2492_v52 }
 0x20a   :  { %v1915_v49 = vpop.eup %1914  ;;  %v2676_v46 = vadd.f32 1.0, %v1913_v19  ;;  %1916 = vpow2.f32 %v1854_v47  ;;  %1060 = vmatpush.msra.mxu3 %v2498_v54  ;;  %v496_v47 = vld [vmem:[#allocation4 + $0x50] sm:$0xff]  ;;  %1041 = vmatpush.msra.mxu2 %v2506_v58 }
 0x20b   :  { %v2680_v37 = vadd.f32 1.0, %v1915_v49  ;;  %v619_v49 = vpop.f32.mrf.mxu2  ;;  %1001 = vmatpush.msra.mxu0 %v2502_v55  ;;  %1021 = vmatpush.msra.mxu1 %v2504_v57 }
 0x20c   :  { %1918 = vrcp.f32 %v2676_v46  ;;  %1061 = vmatpush.msra.mxu3 %v2510_v59  ;;  %v644_v52 = vadd.f32 %v619_v49, %v496_v47  ;;  %1042 = vmatpush.msra.mxu2 %v2518_v63  ;;  %vm655_vm10 = vweird.f32 %v2676_v46 }
 0x20d   :  { %1920 = vrcp.f32 %v2680_v37  ;;  %1002 = vmatpush.msra.mxu0 %v2514_v61  ;;  %1022 = vmatpush.msra.mxu1 %v2516_v62  ;;  %vm674_vm11 = vweird.f32 %v2680_v37 }
 0x20e   :  { %1062 = vmatpush.msra.mxu3 %v2522_v60  ;;  %1043 = vmatpush.msra.mxu2 %v2530_v3  ;;  %v661_v60 = vand.u32 2147483648, %v2676_v46  ;;  %v659_v3 = vand.u32 2147483647, %v2676_v46 }
 0x20f   :  { %1003 = vmatpush.msra.mxu0 %v2526_v1  ;;  %1023 = vmatpush.msra.mxu1 %v2528_v2  ;;  %v680_v2 = vand.u32 2147483648, %v2680_v37 }
 0x210   :  { %v1917_v19 = vpop.eup %1916  ;;  %1063 = vmatpush.msra.mxu3 %v2534_v4  ;;  %1044 = vmatpush.msra.mxu2 %v2542_v7  ;;  %vm660_vm14 = vcmp.eq.f32.partialorder %v659_v3, 8.507059e+37 }
 0x211   :  { %v2696_v27 = vadd.f32 1.0, %v1917_v19  ;;  %1004 = vmatpush.msra.mxu0 %v2538_v5  ;;  %1024 = vmatpush.msra.mxu1 %v2540_v6 }
 0x212   :  { %v1919_v53 = vpop.eup %1918  ;;  %1064 = vmatpush.msra.mxu3 %v2546_v8  ;;  %1045 = vmatpush.msra.mxu2 %v2554_v11 }
 0x213   :  { %v1921_v55 = vpop.eup %1920  ;;  %v651_v57 = vmul.f32 %v1919_v53, %v2676_v46  ;;  %1922 = vrcp.f32 %v2696_v27  ;;  %vm656_vm8 = vweird.f32 %v1919_v53  ;;  %1005 = vmatpush.msra.mxu0 %v2550_v9  ;;  %1025 = vmatpush.msra.mxu1 %v2552_v10  ;;  %vm694_vm1 = vweird.f32 %v2696_v27 }
 0x214   :  { %v670_v19 = vmul.f32 %v1921_v55, %v2680_v37  ;;  %1924 = vtanh.f32 %v644_v52  ;;  %vm675_vm9 = vweird.f32 %v1921_v55  ;;  %1065 = vmatpush.msra.mxu3 %v2558_v12  ;;  %vm657_vm12 = vmor %vm655_vm10, %vm656_vm8  ;;  %1046 = vmatpush.msra.mxu2 %v2566_v15 }
 0x215   :  { %v652_v47 = vsub.f32 1.0, %v651_v57  ;;  %1006 = vmatpush.msra.mxu0 %v2562_v13  ;;  %1026 = vmatpush.msra.mxu1 %v2564_v14  ;;  %vm676_vm13 = vmor %vm674_vm11, %vm675_vm9 }
 0x216   :  { %v671_v49 = vsub.f32 1.0, %v670_v19  ;;  %v678_v19 = vand.u32 2147483647, %v2680_v37  ;;  %1066 = vmatpush.msra.mxu3 %v2570_v16  ;;  %1047 = vmatpush.msra.mxu2 %v2578_v18 }
 0x217   :  { %v653_v1 = vmul.f32 %v1919_v53, %v652_v47  ;;  %v662_v47 = vor.u32 1.1754944e-38, %v661_v60  ;;  %1007 = vmatpush.msra.mxu0 %v2574_v0  ;;  %1027 = vmatpush.msra.mxu1 %v2576_v17 }
 0x218   :  { %v672_v57 = vmul.f32 %v1921_v55, %v671_v49  ;;  %vm679_vm15 = vcmp.eq.f32.partialorder %v678_v19, 8.507059e+37  ;;  %1067 = vmatpush.msra.mxu3 %v2582_v21  ;;  %1048 = vmatpush.msra.mxu2 %v2590_v24  ;;  %v3255_v19 = vld [vmem:[#allocation33_spill] sm:$0xff] }
 0x219   :  { %v2721_v52 = vpop.eup %1922  ;;  %v654_v8 = vadd.f32 %v1919_v53, %v653_v1  ;;  %v681_v1 = vor.u32 1.1754944e-38, %v680_v2  ;;  %1008 = vmatpush.msra.mxu0 %v2586_v22  ;;  %1028 = vmatpush.msra.mxu1 %v2588_v23 }
 0x21a   :  { %v673_v49 = vadd.f32 %v1921_v55, %v672_v57  ;;  %v690_v11 = vmul.f32 %v2721_v52, %v2696_v27  ;;  %v1925_v37 = vpop.eup %1924  ;;  %1068 = vmatpush.msra.mxu3 %v2594_v25  ;;  %1049 = vmatpush.msra.mxu2 %v2602_v30  ;;  %vm695_vm0 = vweird.f32 %v2721_v52 }
 0x21b   :  { %v658_v46 = vsel %vm657_vm12, %v1919_v53, %v654_v8  ;;  %1009 = vmatpush.msra.mxu0 %v2598_v28  ;;  %1029 = vmatpush.msra.mxu1 %v2600_v29  ;;  %v698_v8 = vand.u32 2147483647, %v2696_v27  ;;  %vm696_vm2 = vmor %vm694_vm1, %vm695_vm0 }
 0x21c   :  { %v663_v14 = vsel %vm660_vm14, %v662_v47, %v658_v46  ;;  %v677_v60 = vsel %vm676_vm13, %v1921_v55, %v673_v49  ;;  %v691_v57 = vsub.f32 1.0, %v690_v11  ;;  %1069 = vmatpush.msra.mxu3 %v2606_v33  ;;  %1050 = vmatpush.msra.mxu2 %v2614_v36  ;;  %v3256_v47 = vld [vmem:[#allocation34_spill] sm:$0xff]  ;;  %v3258_v49 = vld [vmem:[#allocation36_spill] sm:$0xff] }
 0x21d   :  { %v682_v15 = vsel %vm679_vm15, %v681_v1, %v677_v60  ;;  %v705_v16 = vmul.f32 %v1925_v37, %v663_v14  ;;  %1010 = vmatpush.msra.mxu0 %v2610_v34  ;;  %1030 = vmatpush.msra.mxu1 %v2612_v35  ;;  %v3253_v14 = vld [vmem:[#allocation31_spill] sm:$0xff]  ;;  %vm699_vm3 = vcmp.eq.f32.partialorder %v698_v8, 8.507059e+37  ;;  %v3259_v37 = vld [vmem:[#allocation16_spill] sm:$0xff]  ;;  %v3260_v60 = vld [vmem:[#allocation17_spill] sm:$0xff] }
 0x21e   :  { %v704_v53 = vmul.f32 %v682_v15, %v2478_v41  ;;  %v692_v2 = vmul.f32 %v2721_v52, %v691_v57  ;;  %v700_v41 = vand.u32 2147483648, %v2696_v27  ;;  %1070 = vmatpush.msra.mxu3 %v2618_v40  ;;  %1051 = vmatpush.msra.mxu2 %v2626_v44  ;;  %v3254_v15 = vld [vmem:[#allocation32_spill] sm:$0xff]  ;;  %v3257_v27 = vld [vmem:[#allocation35_spill] sm:$0xff]  ;;  %v3261_v57 = vmax.f32 %v3259_v37, %v3260_v60 }
 0x21f   :  { %1011 = vmatpush.msra.mxu0 %v2622_v42  ;;  %1031 = vmatpush.msra.mxu1 %v2624_v43  ;;  %v3265_v8 = vld [vmem:[#allocation20_spill] sm:$0xff] }
 0x220   :  { %v2745_v55 = vadd.f32 %v705_v16, %v704_v53  ;;  %v693_v3 = vadd.f32 %v2721_v52, %v692_v2  ;;  %1071 = vmatpush.msra.mxu3 %v2630_v45  ;;  %v701_v16 = vor.u32 1.1754944e-38, %v700_v41  ;;  %1052 = vmatpush.msra.mxu2 %v3255_v19  ;;  %v3262_v2 = vld [vmem:[#allocation37_spill] sm:$0xff]  ;;  %v3264_v41 = vld [vmem:[#allocation19_spill] sm:$0xff] }
 0x221   :  { %1012 = vmatpush.msra.mxu0 %v3253_v14  ;;  %1032 = vmatpush.msra.mxu1 %v3254_v15 }
 0x222   :  { %1926 = vtanh.f32 %v2745_v55  ;;  %v697_v11 = vsel %vm696_vm2, %v2721_v52, %v693_v3  ;;  %1072 = vmatpush.msra.mxu3 %v3256_v47  ;;  %1053 = vmatpush.msra.mxu2 %v2648_v31  ;;  %v3263_v3 = vld [vmem:[#allocation18_spill] sm:$0xff] }
 0x223   :  { %1013 = vmatpush.msra.mxu0 %v3257_v27  ;;  %1033 = vmatpush.msra.mxu1 %v3258_v49  ;;  %v702_v46 = vsel %vm699_vm3, %v701_v16, %v697_v11  ;;  %v3266_v11 = vld [vmem:[#allocation21_spill] sm:$0xff]  ;;  %v3268_v16 = vld [vmem:[#allocation23_spill] sm:$0xff] }
 0x224   :  { %1073 = vmatpush.msra.mxu3 %v2650_v32  ;;  %1054 = vmatpush.msra.mxu2 %v2660_v50 }
 0x225   :  { %1014 = vmatpush.msra.mxu0 %v2654_v38  ;;  %1034 = vmatpush.msra.mxu1 %v2656_v48 }
 0x226   :  { %1074 = vmatpush.msra.mxu3 %v2662_v56  ;;  %1055 = vmatpush.msra.mxu2 %v2672_v20 }
 0x227   :  { %1015 = vmatpush.msra.mxu0 %v2666_v39  ;;  %1035 = vmatpush.msra.mxu1 %v2668_v26 }
 0x228   :  { %v1927_v1 = vpop.eup %1926  ;;  %1075 = vmatpush.msra.mxu3 %v3262_v2 }
 0x229   :  { %v708_v52 = vmul.f32 %v1927_v1, %v702_v46  ;;  %v3269_v1 = vld [vmem:[#allocation24_spill] sm:$0xff] }
 0x22b   :  { %710 = vst [vmem:[#allocation9 + $0x10] sm:$0xff] %v708_v52  ;;  %797 = vmatmul.f32.vlgmr.msrb.gmra.mxu0 %v708_v52  ;;  %817 = vmatmul.f32.vlgmr.msrb.gmra.mxu1 %v708_v52  ;;  %v2779_v53 = vmax.f32 %v3261_v57, %v708_v52 }
 0x22c   :  { %837 = vmatmul.f32.vlgmr.msrb.gmra.mxu2 %v708_v52  ;;  %857 = vmatmul.f32.vlgmr.msrb.gmra.mxu3 %v708_v52 }
 0x22d   :  { %1219 = vmatpush.msrb.mxu0 %v2490_v51  ;;  %1239 = vmatpush.msrb.mxu1 %v3263_v3  ;;  %v3267_v51 = vld [vmem:[#allocation22_spill] sm:$0xff] }
 0x22e   :  { %1259 = vmatpush.msrb.mxu2 %v3264_v41  ;;  %1279 = vmatpush.msrb.mxu3 %v2498_v54  ;;  %v3270_v54 = vld [vmem:[#allocation25_spill] sm:$0xff] }
 0x22f   :  { %1220 = vmatpush.msrb.mxu0 %v3265_v8  ;;  %1240 = vmatpush.msrb.mxu1 %v3266_v11 }
 0x230   :  { %1260 = vmatpush.msrb.mxu2 %v2506_v58  ;;  %1280 = vmatpush.msrb.mxu3 %v2510_v59  ;;  %v3271_v58 = vld [vmem:[#allocation26_spill] sm:$0xff]  ;;  %v3272_v59 = vld [vmem:[#allocation27_spill] sm:$0xff] }
 0x231   :  { %1221 = vmatpush.msrb.mxu0 %v2514_v61  ;;  %1241 = vmatpush.msrb.mxu1 %v2516_v62  ;;  %v3273_v61 = vld [vmem:[#allocation28_spill] sm:$0xff]  ;;  %v3274_v62 = vld [vmem:[#allocation29_spill] sm:$0xff] }
 0x232   :  { %1261 = vmatpush.msrb.mxu2 %v2518_v63  ;;  %1281 = vmatpush.msrb.mxu3 %v3267_v51  ;;  %v3275_v63 = vld [vmem:[#allocation30_spill] sm:$0xff] }
 0x233   :  { %1222 = vmatpush.msrb.mxu0 %v3268_v16  ;;  %1242 = vmatpush.msrb.mxu1 %v3269_v1 }
 0x234   :  { %1262 = vmatpush.msrb.mxu2 %v3270_v54  ;;  %1282 = vmatpush.msrb.mxu3 %v2534_v4  ;;  %v713_v4 = vld [vmem:[#allocation4 + $0x60] sm:$0xff] }
 0x235   :  { %1223 = vmatpush.msrb.mxu0 %v2538_v5  ;;  %1243 = vmatpush.msrb.mxu1 %v2540_v6  ;;  %v714_v5 = vld [vmem:[#allocation4 + $0x68] sm:$0xff] }
 0x236   :  { %1263 = vmatpush.msrb.mxu2 %v2542_v7  ;;  %1283 = vmatpush.msrb.mxu3 %v3271_v58  ;;  %v932_v58 = vld [vmem:[#allocation4 + $0x80] sm:$0xff] }
 0x237   :  { %1224 = vmatpush.msrb.mxu0 %v2550_v9  ;;  %1244 = vmatpush.msrb.mxu1 %v2552_v10 }
 0x238   :  { %1264 = vmatpush.msrb.mxu2 %v3272_v59  ;;  %1284 = vmatpush.msrb.mxu3 %v2558_v12  ;;  %v933_v59 = vld [vmem:[#allocation4 + $0x88] sm:$0xff] }
 0x239   :  { %1225 = vmatpush.msrb.mxu0 %v2562_v13  ;;  %1245 = vmatpush.msrb.mxu1 %v3273_v61 }
 0x23a   :  { %1265 = vmatpush.msrb.mxu2 %v3274_v62  ;;  %1285 = vmatpush.msrb.mxu3 %v3275_v63 }
 0x23b   :  { %1226 = vmatpush.msrb.mxu0 %v2574_v0  ;;  %1246 = vmatpush.msrb.mxu1 %v2576_v17 }
 0x23c   :  { %1266 = vmatpush.msrb.mxu2 %v2578_v18  ;;  %1286 = vmatpush.msrb.mxu3 %v2582_v21 }
 0x23d   :  { %1227 = vmatpush.msrb.mxu0 %v2586_v22  ;;  %1247 = vmatpush.msrb.mxu1 %v2588_v23  ;;  %v715_v23 = vld [vmem:[#allocation4 + $0x70] sm:$0xff] }
 0x23e   :  { %1267 = vmatpush.msrb.mxu2 %v2590_v24  ;;  %1287 = vmatpush.msrb.mxu3 %v2594_v25 }
 0x23f   :  { %1228 = vmatpush.msrb.mxu0 %v2598_v28  ;;  %1248 = vmatpush.msrb.mxu1 %v2600_v29 }
 0x240   :  { %1268 = vmatpush.msrb.mxu2 %v2602_v30  ;;  %1288 = vmatpush.msrb.mxu3 %v2606_v33 }
 0x241   :  { %1229 = vmatpush.msrb.mxu0 %v2610_v34  ;;  %1249 = vmatpush.msrb.mxu1 %v2612_v35 }
 0x242   :  { %1269 = vmatpush.msrb.mxu2 %v2614_v36  ;;  %1289 = vmatpush.msrb.mxu3 %v2618_v40 }
 0x243   :  { %1230 = vmatpush.msrb.mxu0 %v2622_v42  ;;  %1250 = vmatpush.msrb.mxu1 %v2624_v43 }
 0x244   :  { %1270 = vmatpush.msrb.mxu2 %v2626_v44  ;;  %1290 = vmatpush.msrb.mxu3 %v2630_v45 }
 0x245   :  { %1231 = vmatpush.msrb.mxu0 %v3253_v14  ;;  %1251 = vmatpush.msrb.mxu1 %v3254_v15 }
 0x246   :  { %1271 = vmatpush.msrb.mxu2 %v3255_v19  ;;  %1291 = vmatpush.msrb.mxu3 %v3256_v47 }
 0x247   :  { %1232 = vmatpush.msrb.mxu0 %v3257_v27  ;;  %1252 = vmatpush.msrb.mxu1 %v3258_v49 }
 0x248   :  { %1272 = vmatpush.msrb.mxu2 %v2648_v31  ;;  %1292 = vmatpush.msrb.mxu3 %v2650_v32 }
 0x249   :  { %1233 = vmatpush.msrb.mxu0 %v2654_v38  ;;  %1253 = vmatpush.msrb.mxu1 %v2656_v48 }
 0x24a   :  { %1273 = vmatpush.msrb.mxu2 %v2660_v50  ;;  %1293 = vmatpush.msrb.mxu3 %v2662_v56  ;;  %v716_v50 = vld [vmem:[#allocation4 + $0x78] sm:$0xff] }
 0x24b   :  { %1234 = vmatpush.msrb.mxu0 %v2666_v39  ;;  %1254 = vmatpush.msrb.mxu1 %v2668_v26 }
 0x24c   :  { %1274 = vmatpush.msrb.mxu2 %v2672_v20  ;;  %1294 = vmatpush.msrb.mxu3 %v3262_v2 }
 0x2a8   :  { %v798_v6 = vpop.f32.mrf.mxu0  ;;  %v818_v7 = vpop.f32.mrf.mxu1 }
 0x2a9   :  { %v861_v9 = vadd.f32 %v798_v6, %v713_v4  ;;  %v862_v10 = vadd.f32 %v818_v7, %v714_v5  ;;  %v935_v7 = vld [vmem:[#allocation4 + $0x98] sm:$0xff] }
 0x2ab   :  { %v1855_v12 = vmul.f32 -1.442695, %v861_v9  ;;  %v1856_v48 = vmul.f32 -1.442695, %v862_v10 }
 0x2ad   :  { %1928 = vpow2.f32 %v1855_v12 }
 0x2ae   :  { %1930 = vpow2.f32 %v1856_v48 }
 0x2af   :  { %v858_v56 = vpop.f32.mrf.mxu3  ;;  %v838_v24 = vpop.f32.mrf.mxu2 }
 0x2b0   :  { %v864_v13 = vadd.f32 %v858_v56, %v716_v50  ;;  %v863_v30 = vadd.f32 %v838_v24, %v715_v23 }
 0x2b2   :  { %v1857_v0 = vmul.f32 -1.442695, %v864_v13 }
 0x2b3   :  { %v1929_v17 = vpop.eup %1928 }
 0x2b4   :  { %v1931_v18 = vpop.eup %1930  ;;  %v868_v21 = vadd.f32 1.0, %v1929_v17  ;;  %1932 = vpow2.f32 %v1857_v0  ;;  %v934_v0 = vld [vmem:[#allocation4 + $0x90] sm:$0xff] }
 0x2b5   :  { %v887_v22 = vadd.f32 1.0, %v1931_v18 }
 0x2b6   :  { %1934 = vrcp.f32 %v868_v21  ;;  %v880_v42 = vand.u32 2147483648, %v868_v21  ;;  %v878_v45 = vand.u32 2147483647, %v868_v21  ;;  %vm874_vm6 = vweird.f32 %v868_v21 }
 0x2b7   :  { %1936 = vrcp.f32 %v887_v22  ;;  %v899_v43 = vand.u32 2147483648, %v887_v22  ;;  %v897_v31 = vand.u32 2147483647, %v887_v22  ;;  %vm893_vm7 = vweird.f32 %v887_v22 }
 0x2b8   :  { %v881_v39 = vor.u32 1.1754944e-38, %v880_v42  ;;  %vm879_vm10 = vcmp.eq.f32.partialorder %v878_v45, 8.507059e+37 }
 0x2b9   :  { %v900_v15 = vor.u32 1.1754944e-38, %v899_v43  ;;  %vm898_vm11 = vcmp.eq.f32.partialorder %v897_v31, 8.507059e+37 }
 0x2ba   :  { %v1933_v25 = vpop.eup %1932 }
 0x2bb   :  { %v907_v28 = vadd.f32 1.0, %v1933_v25 }
 0x2bc   :  { %v1935_v29 = vpop.eup %1934 }
 0x2bd   :  { %v1937_v33 = vpop.eup %1936  ;;  %v870_v34 = vmul.f32 %v1935_v29, %v868_v21  ;;  %1938 = vrcp.f32 %v907_v28  ;;  %vm875_vm4 = vweird.f32 %v1935_v29  ;;  %v919_v41 = vand.u32 2147483648, %v907_v28 }
 0x2be   :  { %v889_v35 = vmul.f32 %v1937_v33, %v887_v22  ;;  %1940 = vtanh.f32 %v863_v30  ;;  %vm894_vm5 = vweird.f32 %v1937_v33  ;;  %vm876_vm8 = vmor %vm874_vm6, %vm875_vm4  ;;  %vm913_vm13 = vweird.f32 %v907_v28 }
 0x2bf   :  { %v871_v36 = vsub.f32 1.0, %v870_v34  ;;  %vm895_vm9 = vmor %vm893_vm7, %vm894_vm5  ;;  %v917_v8 = vand.u32 2147483647, %v907_v28  ;;  %v920_v51 = vor.u32 1.1754944e-38, %v919_v41 }
 0x2c0   :  { %v890_v40 = vsub.f32 1.0, %v889_v35 }
 0x2c1   :  { %v872_v44 = vmul.f32 %v1935_v29, %v871_v36  ;;  %vm918_vm15 = vcmp.eq.f32.partialorder %v917_v8, 8.507059e+37 }
 0x2c2   :  { %v891_v20 = vmul.f32 %v1937_v33, %v890_v40 }
 0x2c3   :  { %v1939_v32 = vpop.eup %1938  ;;  %v873_v38 = vadd.f32 %v1935_v29, %v872_v44 }
 0x2c4   :  { %v892_v26 = vadd.f32 %v1937_v33, %v891_v20  ;;  %v909_v14 = vmul.f32 %v1939_v32, %v907_v28  ;;  %v1941_v47 = vpop.eup %1940  ;;  %vm914_vm12 = vweird.f32 %v1939_v32 }
 0x2c5   :  { %v877_v19 = vsel %vm876_vm8, %v1935_v29, %v873_v38  ;;  %vm915_vm14 = vmor %vm913_vm13, %vm914_vm12 }
 0x2c6   :  { %v882_v27 = vsel %vm879_vm10, %v881_v39, %v877_v19  ;;  %v896_v49 = vsel %vm895_vm9, %v1937_v33, %v892_v26  ;;  %v910_v46 = vsub.f32 1.0, %v909_v14 }
 0x2c7   :  { %v901_v52 = vsel %vm898_vm11, %v900_v15, %v896_v49  ;;  %v924_v37 = vmul.f32 %v1941_v47, %v882_v27 }
 0x2c8   :  { %v923_v60 = vmul.f32 %v901_v52, %v2745_v55  ;;  %v911_v57 = vmul.f32 %v1939_v32, %v910_v46 }
 0x2ca   :  { %v2850_v2 = vadd.f32 %v924_v37, %v923_v60  ;;  %v912_v3 = vadd.f32 %v1939_v32, %v911_v57 }
 0x2cc   :  { %1942 = vtanh.f32 %v2850_v2  ;;  %v916_v11 = vsel %vm915_vm14, %v1939_v32, %v912_v3 }
 0x2cd   :  { %v921_v1 = vsel %vm918_vm15, %v920_v51, %v916_v11  ;;  %v2871_v51 = vld [vmem:[#allocation7 + $0x1e0] sm:$0xff] }
 0x2d2   :  { %v1943_v16 = vpop.eup %1942 }
 0x2d3   :  { %v2853_v54 = vmul.f32 %v1943_v16, %v921_v1  ;;  %v2873_v16 = vld [vmem:[#allocation7 + $0x1e8] sm:$0xff]  ;;  %v2875_v1 = vld [vmem:[#allocation7 + $0x1f0] sm:$0xff] }
 0x2d5   :  { %929 = vst [vmem:[#allocation9 + $0x18] sm:$0xff] %v2853_v54  ;;  %1016 = vmatmul.f32.vlgmr.msra.gmra.mxu0 %v2853_v54  ;;  %1036 = vmatmul.f32.vlgmr.msra.gmra.mxu1 %v2853_v54  ;;  %v930_v55 = vmax.f32 %v2779_v53, %v2853_v54  ;;  %v2883_v53 = vld [vmem:[#allocation7 + $0x1c0] sm:$0xff] }
 0x2d6   :  { %1056 = vmatmul.f32.vlgmr.msra.gmra.mxu2 %v2853_v54  ;;  %1076 = vmatmul.f32.vlgmr.msra.gmra.mxu3 %v2853_v54  ;;  %v2885_v54 = vld [vmem:[#allocation7 + $0x1c8] sm:$0xff] }
 0x2d7   :  { %1438 = vmatpush.msra.mxu0 %v2871_v51  ;;  %1458 = vmatpush.msra.mxu1 %v2873_v16 }
 0x2d8   :  { %1478 = vmatpush.msra.mxu2 %v2875_v1 }
 0x2d9   :  { %1439 = vmatpush.msra.mxu0 %v2883_v53  ;;  %1459 = vmatpush.msra.mxu1 %v2885_v54 }
 0x352   :  { %v1017_v61 = vpop.f32.mrf.mxu0  ;;  %v1037_v62 = vpop.f32.mrf.mxu1 }
 0x353   :  { %v1080_v63 = vadd.f32 %v1017_v61, %v932_v58  ;;  %v1081_v4 = vadd.f32 %v1037_v62, %v933_v59  ;;  %v2879_v58 = vld [vmem:[#allocation7 + $0x1f8] sm:$0xff]  ;;  %v2895_v61 = vld [vmem:[#allocation7 + $0x1a0] sm:$0xff]  ;;  %v2897_v62 = vld [vmem:[#allocation7 + $0x1a8] sm:$0xff] }
 0x354   :  { %1498 = vmatpush.msra.mxu3 %v2879_v58  ;;  %v2891_v59 = vld [vmem:[#allocation7 + $0x1d8] sm:$0xff]  ;;  %1440 = vmatpush.msra.mxu0 %v2895_v61 }
 0x355   :  { %v1858_v5 = vmul.f32 -1.442695, %v1080_v63  ;;  %v1859_v6 = vmul.f32 -1.442695, %v1081_v4  ;;  %v2899_v63 = vld [vmem:[#allocation7 + $0x1b0] sm:$0xff]  ;;  %1460 = vmatpush.msra.mxu1 %v2897_v62  ;;  %v2903_v4 = vld [vmem:[#allocation7 + $0x1b8] sm:$0xff] }
 0x356   :  { %1499 = vmatpush.msra.mxu3 %v2891_v59 }
 0x357   :  { %1944 = vpow2.f32 %v1858_v5  ;;  %v2907_v5 = vld [vmem:[#allocation7 + $0x180] sm:$0xff] }
 0x358   :  { %1946 = vpow2.f32 %v1859_v6  ;;  %1500 = vmatpush.msra.mxu3 %v2903_v4  ;;  %v2909_v6 = vld [vmem:[#allocation7 + $0x188] sm:$0xff]  ;;  %1441 = vmatpush.msra.mxu0 %v2907_v5 }
 0x359   :  { %v1077_v9 = vpop.f32.mrf.mxu3  ;;  %v1057_v17 = vpop.f32.mrf.mxu2  ;;  %1461 = vmatpush.msra.mxu1 %v2909_v6 }
 0x35a   :  { %v1083_v10 = vadd.f32 %v1077_v9, %v935_v7  ;;  %v1082_v23 = vadd.f32 %v1057_v17, %v934_v0  ;;  %v2911_v7 = vld [vmem:[#allocation7 + $0x190] sm:$0xff]  ;;  %v2915_v9 = vld [vmem:[#allocation7 + $0x198] sm:$0xff] }
 0x35b   :  { %1501 = vmatpush.msra.mxu3 %v2915_v9  ;;  %v2935_v0 = vld [vmem:[#allocation7 + $0x150] sm:$0xff]  ;;  %v2939_v17 = vld [vmem:[#allocation7 + $0x158] sm:$0xff] }
 0x35c   :  { %v1860_v12 = vmul.f32 -1.442695, %v1083_v10  ;;  %v2919_v10 = vld [vmem:[#allocation7 + $0x160] sm:$0xff] }
 0x35d   :  { %v1945_v48 = vpop.eup %1944  ;;  %1442 = vmatpush.msra.mxu0 %v2919_v10 }
 0x35e   :  { %v1947_v50 = vpop.eup %1946  ;;  %v1087_v56 = vadd.f32 1.0, %v1945_v48  ;;  %1948 = vpow2.f32 %v1860_v12  ;;  %v2921_v12 = vld [vmem:[#allocation7 + $0x168] sm:$0xff]  ;;  %v2923_v48 = vld [vmem:[#allocation7 + $0x170] sm:$0xff] }
 0x35f   :  { %v1106_v13 = vadd.f32 1.0, %v1947_v50  ;;  %1462 = vmatpush.msra.mxu1 %v2921_v12  ;;  %v2927_v50 = vld [vmem:[#allocation7 + $0x178] sm:$0xff] }
 0x360   :  { %1950 = vrcp.f32 %v1087_v56  ;;  %v1099_v33 = vand.u32 2147483648, %v1087_v56  ;;  %v1097_v36 = vand.u32 2147483647, %v1087_v56  ;;  %vm1093_vm2 = vweird.f32 %v1087_v56  ;;  %1502 = vmatpush.msra.mxu3 %v2927_v50 }
 0x361   :  { %1952 = vrcp.f32 %v1106_v13  ;;  %v1118_v34 = vand.u32 2147483648, %v1106_v13  ;;  %v1116_v42 = vand.u32 2147483647, %v1106_v13  ;;  %vm1112_vm3 = vweird.f32 %v1106_v13 }
 0x362   :  { %v1100_v45 = vor.u32 1.1754944e-38, %v1099_v33  ;;  %vm1098_vm6 = vcmp.eq.f32.partialorder %v1097_v36, 8.507059e+37  ;;  %1503 = vmatpush.msra.mxu3 %v2939_v17  ;;  %v2963_v33 = vld [vmem:[#allocation7 + $0x118] sm:$0xff]  ;;  %v2971_v36 = vld [vmem:[#allocation7 + $0xf0] sm:$0xff] }
 0x363   :  { %v1119_v32 = vor.u32 1.1754944e-38, %v1118_v34  ;;  %vm1117_vm7 = vcmp.eq.f32.partialorder %v1116_v42, 8.507059e+37  ;;  %v2967_v34 = vld [vmem:[#allocation7 + $0xe0] sm:$0xff] }
 0x364   :  { %v1949_v18 = vpop.eup %1948 }
 0x365   :  { %v1126_v21 = vadd.f32 1.0, %v1949_v18  ;;  %v2943_v18 = vld [vmem:[#allocation7 + $0x120] sm:$0xff] }
 0x366   :  { %v1951_v22 = vpop.eup %1950 }
 0x367   :  { %v1953_v24 = vpop.eup %1952  ;;  %v1089_v25 = vmul.f32 %v1951_v22, %v1087_v56  ;;  %1954 = vrcp.f32 %v1126_v21  ;;  %vm1094_vm0 = vweird.f32 %v1951_v22  ;;  %v1138_v37 = vand.u32 2147483648, %v1126_v21  ;;  %v2931_v56 = vld [vmem:[#allocation7 + $0x140] sm:$0xff] }
 0x368   :  { %v1108_v28 = vmul.f32 %v1953_v24, %v1106_v13  ;;  %1956 = vtanh.f32 %v1082_v23  ;;  %vm1113_vm1 = vweird.f32 %v1953_v24  ;;  %vm1095_vm4 = vmor %vm1093_vm2, %vm1094_vm0  ;;  %vm1132_vm9 = vweird.f32 %v1126_v21  ;;  %v2933_v13 = vld [vmem:[#allocation7 + $0x148] sm:$0xff]  ;;  %1443 = vmatpush.msra.mxu0 %v2931_v56  ;;  %v2951_v23 = vld [vmem:[#allocation7 + $0x138] sm:$0xff] }
 0x369   :  { %v1090_v29 = vsub.f32 1.0, %v1089_v25  ;;  %vm1114_vm5 = vmor %vm1112_vm3, %vm1113_vm1  ;;  %v1136_v60 = vand.u32 2147483647, %v1126_v21  ;;  %v1139_v3 = vor.u32 1.1754944e-38, %v1138_v37  ;;  %1463 = vmatpush.msra.mxu1 %v2933_v13  ;;  %1504 = vmatpush.msra.mxu3 %v2951_v23  ;;  %v2957_v25 = vld [vmem:[#allocation7 + $0x108] sm:$0xff]  ;;  %v3007_v37 = vld [vmem:[#allocation7 + $0x90] sm:$0xff] }
 0x36a   :  { %v1109_v30 = vsub.f32 1.0, %v1108_v28  ;;  %1444 = vmatpush.msra.mxu0 %v2943_v18  ;;  %v2959_v28 = vld [vmem:[#allocation7 + $0x110] sm:$0xff] }
 0x36b   :  { %v1091_v35 = vmul.f32 %v1951_v22, %v1090_v29  ;;  %vm1137_vm11 = vcmp.eq.f32.partialorder %v1136_v60, 8.507059e+37  ;;  %v1151_v29 = vld [vmem:[#allocation4 + $0xa0] sm:$0xff]  ;;  %1505 = vmatpush.msra.mxu3 %v2963_v33  ;;  %v3011_v60 = vld [vmem:[#allocation7 + $0x98] sm:$0xff] }
 0x36c   :  { %v1110_v40 = vmul.f32 %v1953_v24, %v1109_v30  ;;  %v1152_v30 = vld [vmem:[#allocation4 + $0xa8] sm:$0xff] }
 0x36d   :  { %v1955_v43 = vpop.eup %1954  ;;  %v1092_v44 = vadd.f32 %v1951_v22, %v1091_v35  ;;  %v2969_v35 = vld [vmem:[#allocation7 + $0xe8] sm:$0xff] }
 0x36e   :  { %v1111_v20 = vadd.f32 %v1953_v24, %v1110_v40  ;;  %v1128_v31 = vmul.f32 %v1955_v43, %v1126_v21  ;;  %v1957_v39 = vpop.eup %1956  ;;  %vm1133_vm8 = vweird.f32 %v1955_v43  ;;  %v2945_v21 = vld [vmem:[#allocation7 + $0x128] sm:$0xff]  ;;  %v2975_v40 = vld [vmem:[#allocation7 + $0xf8] sm:$0xff] }
 0x36f   :  { %v1096_v38 = vsel %vm1095_vm4, %v1951_v22, %v1092_v44  ;;  %vm1134_vm10 = vmor %vm1132_vm9, %vm1133_vm8  ;;  %v2947_v22 = vld [vmem:[#allocation7 + $0x130] sm:$0xff]  ;;  %1464 = vmatpush.msra.mxu1 %v2945_v21  ;;  %1506 = vmatpush.msra.mxu3 %v2975_v40  ;;  %v2979_v44 = vld [vmem:[#allocation7 + $0xc0] sm:$0xff] }
 0x370   :  { %v1101_v26 = vsel %vm1098_vm6, %v1100_v45, %v1096_v38  ;;  %v1115_v14 = vsel %vm1114_vm5, %v1953_v24, %v1111_v20  ;;  %v1129_v15 = vsub.f32 1.0, %v1128_v31  ;;  %v2955_v24 = vld [vmem:[#allocation7 + $0x100] sm:$0xff]  ;;  %v2981_v45 = vld [vmem:[#allocation7 + $0xc8] sm:$0xff]  ;;  %v2983_v20 = vld [vmem:[#allocation7 + $0xd0] sm:$0xff] }
 0x371   :  { %v1120_v19 = vsel %vm1117_vm7, %v1119_v32, %v1115_v14  ;;  %v1143_v47 = vmul.f32 %v1957_v39, %v1101_v26  ;;  %1445 = vmatpush.msra.mxu0 %v2955_v24  ;;  %1465 = vmatpush.msra.mxu1 %v2957_v25  ;;  %v2987_v38 = vld [vmem:[#allocation7 + $0xd8] sm:$0xff]  ;;  %v2991_v39 = vld [vmem:[#allocation7 + $0xa0] sm:$0xff]  ;;  %v2993_v26 = vld [vmem:[#allocation7 + $0xa8] sm:$0xff] }
 0x372   :  { %v1142_v27 = vmul.f32 %v1120_v19, %v2850_v2  ;;  %v1130_v49 = vmul.f32 %v1955_v43, %v1129_v15  ;;  %1507 = vmatpush.msra.mxu3 %v2987_v38  ;;  %v2995_v14 = vld [vmem:[#allocation7 + $0xb0] sm:$0xff] }
 0x373   :  { %1446 = vmatpush.msra.mxu0 %v2967_v34  ;;  %1466 = vmatpush.msra.mxu1 %v2969_v35 }
 0x374   :  { %v2863_v46 = vadd.f32 %v1143_v47, %v1142_v27  ;;  %v1131_v52 = vadd.f32 %v1955_v43, %v1130_v49  ;;  %v1154_v47 = vld [vmem:[#allocation4 + $0xb8] sm:$0xff]  ;;  %v3003_v49 = vld [vmem:[#allocation7 + $0x80] sm:$0xff] }
 0x375   :  { %1447 = vmatpush.msra.mxu0 %v2979_v44  ;;  %1467 = vmatpush.msra.mxu1 %v2981_v45  ;;  %v2999_v27 = vld [vmem:[#allocation7 + $0xb8] sm:$0xff] }
 0x376   :  { %1958 = vtanh.f32 %v2863_v46  ;;  %v1135_v57 = vsel %vm1134_vm10, %v1955_v43, %v1131_v52  ;;  %1508 = vmatpush.msra.mxu3 %v2999_v27  ;;  %v3005_v52 = vld [vmem:[#allocation7 + $0x88] sm:$0xff] }
 0x377   :  { %v1140_v8 = vsel %vm1137_vm11, %v1139_v3, %v1135_v57  ;;  %1448 = vmatpush.msra.mxu0 %v2991_v39  ;;  %1468 = vmatpush.msra.mxu1 %v2993_v26  ;;  %v3013_v57 = vld [vmem:[#allocation7 + $0x60] sm:$0xff]  ;;  %v3015_v3 = vld [vmem:[#allocation7 + $0x68] sm:$0xff] }
 0x378   :  { %3277 = vst [vmem:[#allocation32_spill] sm:$0xff] %v3013_v57  ;;  %1509 = vmatpush.msra.mxu3 %v3011_v60 }
 0x379   :  { %1449 = vmatpush.msra.mxu0 %v3003_v49  ;;  %1469 = vmatpush.msra.mxu1 %v3005_v52  ;;  %3278 = vst [vmem:[#allocation33_spill] sm:$0xff] %v3015_v3 }
 0x37b   :  { %1450 = vmatpush.msra.mxu0 %v3013_v57  ;;  %1470 = vmatpush.msra.mxu1 %v3015_v3 }
 0x37c   :  { %v1959_v41 = vpop.eup %1958 }
 0x37d   :  { %v1146_v11 = vmul.f32 %v1959_v41, %v1140_v8  ;;  %v3019_v41 = vld [vmem:[#allocation7 + $0x70] sm:$0xff]  ;;  %v3021_v8 = vld [vmem:[#allocation7 + $0x78] sm:$0xff] }
 0x37e   :  { %3279 = vst [vmem:[#allocation34_spill] sm:$0xff] %v3019_v41  ;;  %1510 = vmatpush.msra.mxu3 %v3021_v8 }
 0x37f   :  { %1148 = vst [vmem:[#allocation9 + $0x20] sm:$0xff] %v1146_v11  ;;  %1235 = vmatmul.f32.vlgmr.msrb.gmra.mxu0 %v1146_v11  ;;  %1255 = vmatmul.f32.vlgmr.msrb.gmra.mxu1 %v1146_v11  ;;  %v2869_v2 = vmax.f32 %v930_v55, %v1146_v11  ;;  %v2887_v55 = vld [vmem:[#allocation7 + $0x1d0] sm:$0xff] }
 0x380   :  { %1275 = vmatmul.f32.vlgmr.msrb.gmra.mxu2 %v1146_v11  ;;  %1295 = vmatmul.f32.vlgmr.msrb.gmra.mxu3 %v1146_v11  ;;  %3280 = vst [vmem:[#allocation35_spill] sm:$0xff] %v3021_v8  ;;  %v3023_v11 = vld [vmem:[#allocation7 + $0x40] sm:$0xff] }
 0x381   :  { %3276 = vst [vmem:[#allocation31_spill] sm:$0xff] %v2869_v2  ;;  %1479 = vmatpush.msra.mxu2 %v2887_v55  ;;  %1451 = vmatpush.msra.mxu0 %v3023_v11  ;;  %v3043_v2 = vld [vmem:[#allocation7 + $0x38] sm:$0xff] }
 0x382   :  { %3281 = vst [vmem:[#allocation36_spill] sm:$0xff] %v3023_v11  ;;  %v3053_v11 = vld [vmem:[#allocation7 + $0x10] sm:$0xff] }
 0x383   :  { %1480 = vmatpush.msra.mxu2 %v2899_v63 }
 0x385   :  { %1481 = vmatpush.msra.mxu2 %v2911_v7 }
 0x387   :  { %1482 = vmatpush.msra.mxu2 %v2923_v48 }
 0x389   :  { %1483 = vmatpush.msra.mxu2 %v2935_v0 }
 0x38b   :  { %1484 = vmatpush.msra.mxu2 %v2947_v22 }
 0x38d   :  { %1485 = vmatpush.msra.mxu2 %v2959_v28 }
 0x38f   :  { %1486 = vmatpush.msra.mxu2 %v2971_v36 }
 0x391   :  { %1487 = vmatpush.msra.mxu2 %v2983_v20 }
 0x393   :  { %1488 = vmatpush.msra.mxu2 %v2995_v14 }
 0x395   :  { %1489 = vmatpush.msra.mxu2 %v3007_v37 }
 0x397   :  { %1490 = vmatpush.msra.mxu2 %v3019_v41 }
 0x3fc   :  { %v1236_v42 = vpop.f32.mrf.mxu0  ;;  %v1256_v43 = vpop.f32.mrf.mxu1 }
 0x3fd   :  { %v1299_v31 = vadd.f32 %v1236_v42, %v1151_v29  ;;  %v1300_v32 = vadd.f32 %v1256_v43, %v1152_v30  ;;  %v3027_v30 = vld [vmem:[#allocation7 + $0x48] sm:$0xff]  ;;  %v3029_v42 = vld [vmem:[#allocation7 + $0x50] sm:$0xff]  ;;  %v3031_v43 = vld [vmem:[#allocation7 + $0x58] sm:$0xff] }
 0x3fe   :  { %3282 = vst [vmem:[#allocation16_spill] sm:$0xff] %v3027_v30  ;;  %1471 = vmatpush.msra.mxu1 %v3027_v30  ;;  %1491 = vmatpush.msra.mxu2 %v3029_v42  ;;  %v3055_v30 = vld [vmem:[#allocation7 + $0x18] sm:$0xff] }
 0x3ff   :  { %v1861_v15 = vmul.f32 -1.442695, %v1299_v31  ;;  %v1862_v19 = vmul.f32 -1.442695, %v1300_v32  ;;  %v3035_v32 = vld [vmem:[#allocation7 + $0x20] sm:$0xff]  ;;  %1511 = vmatpush.msra.mxu3 %v3031_v43  ;;  %3283 = vst [vmem:[#allocation17_spill] sm:$0xff] %v3055_v30 }
 0x400   :  { %1452 = vmatpush.msra.mxu0 %v3035_v32 }
 0x401   :  { %1960 = vpow2.f32 %v1861_v15  ;;  %v3037_v15 = vld [vmem:[#allocation7 + $0x28] sm:$0xff]  ;;  %1512 = vmatpush.msra.mxu3 %v3043_v2 }
 0x402   :  { %1962 = vpow2.f32 %v1862_v19  ;;  %v3041_v19 = vld [vmem:[#allocation7 + $0x30] sm:$0xff]  ;;  %1472 = vmatpush.msra.mxu1 %v3037_v15 }
 0x403   :  { %v1296_v29 = vpop.f32.mrf.mxu3  ;;  %1492 = vmatpush.msra.mxu2 %v3041_v19  ;;  %1513 = vmatpush.msra.mxu3 %v3055_v30 }
 0x404   :  { %v1302_v31 = vadd.f32 %v1296_v29, %v1154_v47  ;;  %v3047_v47 = vld [vmem:[#allocation7] sm:$0xff]  ;;  %v3049_v29 = vld [vmem:[#allocation7 + $0x8] sm:$0xff] }
 0x405   :  { %1453 = vmatpush.msra.mxu0 %v3047_v47  ;;  %1473 = vmatpush.msra.mxu1 %v3049_v29 }
 0x406   :  { %v1863_v3 = vmul.f32 -1.442695, %v1302_v31  ;;  %1493 = vmatpush.msra.mxu2 %v3053_v11  ;;  %1717 = vmatpush.msrb.mxu3 %v2879_v58 }
 0x407   :  { %v1961_v8 = vpop.eup %1960  ;;  %1657 = vmatpush.msrb.mxu0 %v2871_v51  ;;  %1677 = vmatpush.msrb.mxu1 %v2873_v16 }
 0x408   :  { %v1963_v41 = vpop.eup %1962  ;;  %v3057_v57 = vadd.f32 1.0, %v1961_v8  ;;  %1964 = vpow2.f32 %v1863_v3  ;;  %1697 = vmatpush.msrb.mxu2 %v2875_v1  ;;  %v1153_v3 = vld [vmem:[#allocation4 + $0xb0] sm:$0xff]  ;;  %1718 = vmatpush.msrb.mxu3 %v2891_v59 }
 0x409   :  { %v3061_v31 = vadd.f32 1.0, %v1963_v41  ;;  %v1276_v41 = vpop.f32.mrf.mxu2  ;;  %1658 = vmatpush.msrb.mxu0 %v2883_v53  ;;  %1678 = vmatpush.msrb.mxu1 %v2885_v54 }
 0x40a   :  { %1966 = vrcp.f32 %v3057_v57  ;;  %1698 = vmatpush.msrb.mxu2 %v2887_v55  ;;  %v1301_v16 = vadd.f32 %v1276_v41, %v1153_v3  ;;  %1719 = vmatpush.msrb.mxu3 %v2903_v4  ;;  %v1318_v59 = vand.u32 2147483648, %v3057_v57  ;;  %vm1312_vm14 = vweird.f32 %v3057_v57  ;;  %v1372_v41 = vld [vmem:[#allocation4 + $0xd0] sm:$0xff] }
 0x40b   :  { %1968 = vrcp.f32 %v3061_v31  ;;  %1659 = vmatpush.msrb.mxu0 %v2895_v61  ;;  %1679 = vmatpush.msrb.mxu1 %v2897_v62  ;;  %v1337_v61 = vand.u32 2147483648, %v3061_v31  ;;  %vm1331_vm15 = vweird.f32 %v3061_v31 }
 0x40c   :  { %1699 = vmatpush.msrb.mxu2 %v2899_v63  ;;  %1720 = vmatpush.msrb.mxu3 %v2915_v9  ;;  %v1316_v63 = vand.u32 2147483647, %v3057_v57  ;;  %v1319_v9 = vor.u32 1.1754944e-38, %v1318_v59 }
 0x40d   :  { %1660 = vmatpush.msrb.mxu0 %v2907_v5  ;;  %1680 = vmatpush.msrb.mxu1 %v2909_v6  ;;  %v1335_v5 = vand.u32 2147483647, %v3061_v31 }
 0x40e   :  { %v1965_v8 = vpop.eup %1964  ;;  %1700 = vmatpush.msrb.mxu2 %v2911_v7  ;;  %1721 = vmatpush.msrb.mxu3 %v2927_v50  ;;  %vm1317_vm2 = vcmp.eq.f32.partialorder %v1316_v63, 8.507059e+37 }
 0x40f   :  { %v3077_v30 = vadd.f32 1.0, %v1965_v8  ;;  %1661 = vmatpush.msrb.mxu0 %v2919_v10  ;;  %1681 = vmatpush.msrb.mxu1 %v2921_v12  ;;  %vm1336_vm3 = vcmp.eq.f32.partialorder %v1335_v5, 8.507059e+37 }
 0x410   :  { %v1967_v51 = vpop.eup %1966  ;;  %1701 = vmatpush.msrb.mxu2 %v2923_v48  ;;  %1722 = vmatpush.msrb.mxu3 %v2939_v17  ;;  %v1338_v48 = vor.u32 1.1754944e-38, %v1337_v61 }
 0x411   :  { %v1969_v1 = vpop.eup %1968  ;;  %v1308_v58 = vmul.f32 %v1967_v51, %v3057_v57  ;;  %1970 = vrcp.f32 %v3077_v30  ;;  %vm1313_vm12 = vweird.f32 %v1967_v51  ;;  %1662 = vmatpush.msrb.mxu0 %v2931_v56  ;;  %1682 = vmatpush.msrb.mxu1 %v2933_v13  ;;  %vm1351_vm5 = vweird.f32 %v3077_v30 }
 0x412   :  { %v1327_v53 = vmul.f32 %v1969_v1, %v3061_v31  ;;  %1972 = vtanh.f32 %v1301_v16  ;;  %vm1332_vm13 = vweird.f32 %v1969_v1  ;;  %1702 = vmatpush.msrb.mxu2 %v2935_v0  ;;  %vm1314_vm0 = vmor %vm1312_vm14, %vm1313_vm12  ;;  %1723 = vmatpush.msrb.mxu3 %v2951_v23 }
 0x413   :  { %v1309_v54 = vsub.f32 1.0, %v1308_v58  ;;  %1663 = vmatpush.msrb.mxu0 %v2943_v18  ;;  %1683 = vmatpush.msrb.mxu1 %v2945_v21  ;;  %vm1333_vm1 = vmor %vm1331_vm15, %vm1332_vm13 }
 0x414   :  { %v1328_v55 = vsub.f32 1.0, %v1327_v53  ;;  %1703 = vmatpush.msrb.mxu2 %v2947_v22  ;;  %1724 = vmatpush.msrb.mxu3 %v2963_v33 }
 0x415   :  { %v1310_v62 = vmul.f32 %v1967_v51, %v1309_v54  ;;  %1664 = vmatpush.msrb.mxu0 %v2955_v24  ;;  %1684 = vmatpush.msrb.mxu1 %v2957_v25 }
 0x416   :  { %v1329_v4 = vmul.f32 %v1969_v1, %v1328_v55  ;;  %1704 = vmatpush.msrb.mxu2 %v2959_v28  ;;  %1725 = vmatpush.msrb.mxu3 %v2975_v40  ;;  %v1355_v28 = vand.u32 2147483647, %v3077_v30  ;;  %v3286_v40 = vld [vmem:[#allocation34_spill] sm:$0xff] }
 0x417   :  { %v3102_v6 = vpop.eup %1970  ;;  %v1311_v7 = vadd.f32 %v1967_v51, %v1310_v62  ;;  %1665 = vmatpush.msrb.mxu0 %v2967_v34  ;;  %1685 = vmatpush.msrb.mxu1 %v2969_v35  ;;  %v3284_v34 = vld [vmem:[#allocation32_spill] sm:$0xff]  ;;  %v3285_v35 = vld [vmem:[#allocation33_spill] sm:$0xff] }
 0x418   :  { %v1330_v10 = vadd.f32 %v1969_v1, %v1329_v4  ;;  %v1347_v12 = vmul.f32 %v3102_v6, %v3077_v30  ;;  %v1973_v56 = vpop.eup %1972  ;;  %1705 = vmatpush.msrb.mxu2 %v2971_v36  ;;  %1726 = vmatpush.msrb.mxu3 %v2987_v38  ;;  %vm1352_vm4 = vweird.f32 %v3102_v6  ;;  %vm1356_vm7 = vcmp.eq.f32.partialorder %v1355_v28, 8.507059e+37 }
 0x419   :  { %v1315_v50 = vsel %vm1314_vm0, %v1967_v51, %v1311_v7  ;;  %1666 = vmatpush.msrb.mxu0 %v2979_v44  ;;  %1686 = vmatpush.msrb.mxu1 %v2981_v45  ;;  %vm1353_vm6 = vmor %vm1351_vm5, %vm1352_vm4  ;;  %v3287_v44 = vld [vmem:[#allocation35_spill] sm:$0xff]  ;;  %v3288_v45 = vld [vmem:[#allocation36_spill] sm:$0xff] }
 0x41a   :  { %v1320_v13 = vsel %vm1317_vm2, %v1319_v9, %v1315_v50  ;;  %v1334_v0 = vsel %vm1333_vm1, %v1969_v1, %v1330_v10  ;;  %v1348_v17 = vsub.f32 1.0, %v1347_v12  ;;  %1706 = vmatpush.msrb.mxu2 %v2983_v20  ;;  %1727 = vmatpush.msrb.mxu3 %v2999_v27  ;;  %v3289_v20 = vld [vmem:[#allocation16_spill] sm:$0xff] }
 0x41b   :  { %v1339_v18 = vsel %vm1336_vm3, %v1338_v48, %v1334_v0  ;;  %v1362_v21 = vmul.f32 %v1973_v56, %v1320_v13  ;;  %1667 = vmatpush.msrb.mxu0 %v2991_v39  ;;  %1687 = vmatpush.msrb.mxu1 %v2993_v26 }
 0x41c   :  { %v1361_v22 = vmul.f32 %v1339_v18, %v2863_v46  ;;  %v1349_v23 = vmul.f32 %v3102_v6, %v1348_v17  ;;  %v1357_v46 = vand.u32 2147483648, %v3077_v30  ;;  %1707 = vmatpush.msrb.mxu2 %v2995_v14  ;;  %1728 = vmatpush.msrb.mxu3 %v3011_v60  ;;  %v3290_v14 = vld [vmem:[#allocation31_spill] sm:$0xff] }
 0x41d   :  { %1668 = vmatpush.msrb.mxu0 %v3003_v49  ;;  %1688 = vmatpush.msrb.mxu1 %v3005_v52  ;;  %v1370_v49 = vld [vmem:[#allocation4 + $0xc0] sm:$0xff]  ;;  %v1371_v52 = vld [vmem:[#allocation4 + $0xc8] sm:$0xff] }
 0x41e   :  { %v3126_v24 = vadd.f32 %v1362_v21, %v1361_v22  ;;  %v1350_v25 = vadd.f32 %v3102_v6, %v1349_v23  ;;  %1708 = vmatpush.msrb.mxu2 %v3007_v37  ;;  %v1358_v36 = vor.u32 1.1754944e-38, %v1357_v46  ;;  %1729 = vmatpush.msrb.mxu3 %v3287_v44 }
 0x41f   :  { %1669 = vmatpush.msrb.mxu0 %v3284_v34  ;;  %1689 = vmatpush.msrb.mxu1 %v3285_v35 }
 0x420   :  { %1974 = vtanh.f32 %v3126_v24  ;;  %v1354_v33 = vsel %vm1353_vm6, %v3102_v6, %v1350_v25  ;;  %1709 = vmatpush.msrb.mxu2 %v3286_v40  ;;  %1730 = vmatpush.msrb.mxu3 %v3031_v43 }
 0x421   :  { %1670 = vmatpush.msrb.mxu0 %v3288_v45  ;;  %1690 = vmatpush.msrb.mxu1 %v3289_v20  ;;  %v1359_v39 = vsel %vm1356_vm7, %v1358_v36, %v1354_v33 }
 0x422   :  { %1710 = vmatpush.msrb.mxu2 %v3029_v42  ;;  %1731 = vmatpush.msrb.mxu3 %v3043_v2  ;;  %v3291_v2 = vld [vmem:[#allocation17_spill] sm:$0xff] }
 0x423   :  { %1671 = vmatpush.msrb.mxu0 %v3035_v32  ;;  %1691 = vmatpush.msrb.mxu1 %v3037_v15  ;;  %v1373_v32 = vld [vmem:[#allocation4 + $0xd8] sm:$0xff] }
 0x424   :  { %1711 = vmatpush.msrb.mxu2 %v3041_v19  ;;  %1732 = vmatpush.msrb.mxu3 %v3291_v2 }
 0x425   :  { %1672 = vmatpush.msrb.mxu0 %v3047_v47  ;;  %1692 = vmatpush.msrb.mxu1 %v3049_v29 }
 0x426   :  { %v1975_v38 = vpop.eup %1974  ;;  %1712 = vmatpush.msrb.mxu2 %v3053_v11 }
 0x427   :  { %v3153_v26 = vmul.f32 %v1975_v38, %v1359_v39  ;;  %v1589_v38 = vld [vmem:[#allocation4 + $0xe0] sm:$0xff]  ;;  %v1590_v39 = vld [vmem:[#allocation4 + $0xe8] sm:$0xff] }
 0x429   :  { %1367 = vst [vmem:[#allocation9 + $0x28] sm:$0xff] %v3153_v26  ;;  %1454 = vmatmul.f32.vlgmr.msra.gmra.mxu0 %v3153_v26  ;;  %1474 = vmatmul.f32.vlgmr.msra.gmra.mxu1 %v3153_v26  ;;  %v1368_v27 = vmax.f32 %v3290_v14, %v3153_v26 }
 0x42a   :  { %1494 = vmatmul.f32.vlgmr.msra.gmra.mxu2 %v3153_v26  ;;  %1514 = vmatmul.f32.vlgmr.msra.gmra.mxu3 %v3153_v26 }
 0x4a6   :  { %v1455_v37 = vpop.f32.mrf.mxu0  ;;  %v1475_v60 = vpop.f32.mrf.mxu1 }
 0x4a7   :  { %v1518_v57 = vadd.f32 %v1455_v37, %v1370_v49  ;;  %v1519_v30 = vadd.f32 %v1475_v60, %v1371_v52 }
 0x4a9   :  { %v1864_v42 = vmul.f32 -1.442695, %v1518_v57  ;;  %v1865_v43 = vmul.f32 -1.442695, %v1519_v30  ;;  %v1592_v30 = vld [vmem:[#allocation4 + $0xf8] sm:$0xff] }
 0x4ab   :  { %1976 = vpow2.f32 %v1864_v42 }
 0x4ac   :  { %1978 = vpow2.f32 %v1865_v43 }
 0x4ad   :  { %v1515_v15 = vpop.f32.mrf.mxu3  ;;  %v1495_v8 = vpop.f32.mrf.mxu2 }
 0x4ae   :  { %v1521_v19 = vadd.f32 %v1515_v15, %v1373_v32  ;;  %v1520_v58 = vadd.f32 %v1495_v8, %v1372_v41 }
 0x4b0   :  { %v1866_v47 = vmul.f32 -1.442695, %v1521_v19  ;;  %v1591_v19 = vld [vmem:[#allocation4 + $0xf0] sm:$0xff] }
 0x4b1   :  { %v1977_v31 = vpop.eup %1976 }
 0x4b2   :  { %v1979_v29 = vpop.eup %1978  ;;  %v1525_v3 = vadd.f32 1.0, %v1977_v31  ;;  %1980 = vpow2.f32 %v1866_v47 }
 0x4b3   :  { %v1544_v11 = vadd.f32 1.0, %v1979_v29 }
 0x4b4   :  { %1982 = vrcp.f32 %v1525_v3  ;;  %v1537_v62 = vand.u32 2147483648, %v1525_v3  ;;  %v1535_v5 = vand.u32 2147483647, %v1525_v3  ;;  %vm1531_vm10 = vweird.f32 %v1525_v3 }
 0x4b5   :  { %1984 = vrcp.f32 %v1544_v11  ;;  %v1556_v63 = vand.u32 2147483648, %v1544_v11  ;;  %v1554_v7 = vand.u32 2147483647, %v1544_v11  ;;  %vm1550_vm11 = vweird.f32 %v1544_v11 }
 0x4b6   :  { %v1538_v12 = vor.u32 1.1754944e-38, %v1537_v62  ;;  %vm1536_vm14 = vcmp.eq.f32.partialorder %v1535_v5, 8.507059e+37 }
 0x4b7   :  { %v1557_v56 = vor.u32 1.1754944e-38, %v1556_v63  ;;  %vm1555_vm15 = vcmp.eq.f32.partialorder %v1554_v7, 8.507059e+37 }
 0x4b8   :  { %v1981_v51 = vpop.eup %1980 }
 0x4b9   :  { %v1564_v16 = vadd.f32 1.0, %v1981_v51 }
 0x4ba   :  { %v1983_v1 = vpop.eup %1982 }
 0x4bb   :  { %v1985_v53 = vpop.eup %1984  ;;  %v1527_v54 = vmul.f32 %v1983_v1, %v1525_v3  ;;  %1986 = vrcp.f32 %v1564_v16  ;;  %vm1532_vm8 = vweird.f32 %v1983_v1  ;;  %v1576_v34 = vand.u32 2147483648, %v1564_v16 }
 0x4bc   :  { %v1546_v55 = vmul.f32 %v1985_v53, %v1544_v11  ;;  %1988 = vtanh.f32 %v1520_v58  ;;  %vm1551_vm9 = vweird.f32 %v1985_v53  ;;  %vm1533_vm12 = vmor %vm1531_vm10, %vm1532_vm8  ;;  %vm1570_vm1 = vweird.f32 %v1564_v16 }
 0x4bd   :  { %v1528_v59 = vsub.f32 1.0, %v1527_v54  ;;  %vm1552_vm13 = vmor %vm1550_vm11, %vm1551_vm9  ;;  %v1574_v35 = vand.u32 2147483647, %v1564_v16  ;;  %v1577_v40 = vor.u32 1.1754944e-38, %v1576_v34 }
 0x4be   :  { %v1547_v61 = vsub.f32 1.0, %v1546_v55 }
 0x4bf   :  { %v1529_v4 = vmul.f32 %v1983_v1, %v1528_v59  ;;  %vm1575_vm3 = vcmp.eq.f32.partialorder %v1574_v35, 8.507059e+37 }
 0x4c0   :  { %v1548_v6 = vmul.f32 %v1985_v53, %v1547_v61 }
 0x4c1   :  { %v1987_v9 = vpop.eup %1986  ;;  %v1530_v10 = vadd.f32 %v1983_v1, %v1529_v4 }
 0x4c2   :  { %v1549_v48 = vadd.f32 %v1985_v53, %v1548_v6  ;;  %v1566_v50 = vmul.f32 %v1987_v9, %v1564_v16  ;;  %v1989_v0 = vpop.eup %1988  ;;  %vm1571_vm0 = vweird.f32 %v1987_v9 }
 0x4c3   :  { %v1534_v13 = vsel %vm1533_vm12, %v1983_v1, %v1530_v10  ;;  %vm1572_vm2 = vmor %vm1570_vm1, %vm1571_vm0 }
 0x4c4   :  { %v1539_v17 = vsel %vm1536_vm14, %v1538_v12, %v1534_v13  ;;  %v1553_v18 = vsel %vm1552_vm13, %v1985_v53, %v1549_v48  ;;  %v1567_v21 = vsub.f32 1.0, %v1566_v50 }
 0x4c5   :  { %v1558_v22 = vsel %vm1555_vm15, %v1557_v56, %v1553_v18  ;;  %v1581_v23 = vmul.f32 %v1989_v0, %v1539_v17 }
 0x4c6   :  { %v1580_v25 = vmul.f32 %v1558_v22, %v3126_v24  ;;  %v1568_v46 = vmul.f32 %v1987_v9, %v1567_v21 }
 0x4c8   :  { %v3171_v28 = vadd.f32 %v1581_v23, %v1580_v25  ;;  %v1569_v33 = vadd.f32 %v1987_v9, %v1568_v46 }
 0x4ca   :  { %1990 = vtanh.f32 %v3171_v28  ;;  %v1573_v36 = vsel %vm1572_vm2, %v1987_v9, %v1569_v33 }
 0x4cb   :  { %v1578_v45 = vsel %vm1575_vm3, %v1577_v40, %v1573_v36 }
 0x4d0   :  { %v1991_v44 = vpop.eup %1990 }
 0x4d1   :  { %v1584_v20 = vmul.f32 %v1991_v44, %v1578_v45 }
 0x4d3   :  { %1586 = vst [vmem:[#allocation9 + $0x30] sm:$0xff] %v1584_v20  ;;  %1673 = vmatmul.f32.vlgmr.msrb.gmra.mxu0 %v1584_v20  ;;  %1693 = vmatmul.f32.vlgmr.msrb.gmra.mxu1 %v1584_v20  ;;  %v3177_v24 = vmax.f32 %v1368_v27, %v1584_v20 }
 0x4d4   :  { %1713 = vmatmul.f32.vlgmr.msrb.gmra.mxu2 %v1584_v20  ;;  %1733 = vmatmul.f32.vlgmr.msrb.gmra.mxu3 %v1584_v20 }
 0x550   :  { %v1674_v2 = vpop.f32.mrf.mxu0  ;;  %v1694_v49 = vpop.f32.mrf.mxu1 }
 0x551   :  { %v1737_v52 = vadd.f32 %v1674_v2, %v1589_v38  ;;  %v1738_v37 = vadd.f32 %v1694_v49, %v1590_v39 }
 0x553   :  { %v1867_v60 = vmul.f32 -1.442695, %v1737_v52  ;;  %v1868_v57 = vmul.f32 -1.442695, %v1738_v37 }
 0x555   :  { %1992 = vpow2.f32 %v1867_v60 }
 0x556   :  { %1994 = vpow2.f32 %v1868_v57 }
 0x557   :  { %v1734_v42 = vpop.f32.mrf.mxu3  ;;  %v1714_v47 = vpop.f32.mrf.mxu2 }
 0x558   :  { %v1740_v43 = vadd.f32 %v1734_v42, %v1592_v30  ;;  %v1739_v11 = vadd.f32 %v1714_v47, %v1591_v19 }
 0x55a   :  { %v1869_v32 = vmul.f32 -1.442695, %v1740_v43 }
 0x55b   :  { %v1993_v15 = vpop.eup %1992 }
 0x55c   :  { %v1995_v26 = vpop.eup %1994  ;;  %v1744_v14 = vadd.f32 1.0, %v1993_v15  ;;  %1996 = vpow2.f32 %v1869_v32 }
 0x55d   :  { %v1763_v27 = vadd.f32 1.0, %v1995_v26 }
 0x55e   :  { %1998 = vrcp.f32 %v1744_v14  ;;  %v1756_v58 = vand.u32 2147483648, %v1744_v14  ;;  %v1754_v55 = vand.u32 2147483647, %v1744_v14  ;;  %vm1750_vm6 = vweird.f32 %v1744_v14 }
 0x55f   :  { %2000 = vrcp.f32 %v1763_v27  ;;  %v1775_v53 = vand.u32 2147483648, %v1763_v27  ;;  %v1773_v61 = vand.u32 2147483647, %v1763_v27  ;;  %vm1769_vm7 = vweird.f32 %v1763_v27 }
 0x560   :  { %v1757_v4 = vor.u32 1.1754944e-38, %v1756_v58  ;;  %vm1755_vm10 = vcmp.eq.f32.partialorder %v1754_v55, 8.507059e+37 }
 0x561   :  { %v1776_v7 = vor.u32 1.1754944e-38, %v1775_v53  ;;  %vm1774_vm11 = vcmp.eq.f32.partialorder %v1773_v61, 8.507059e+37 }
 0x562   :  { %v1997_v31 = vpop.eup %1996 }
 0x563   :  { %v1783_v29 = vadd.f32 1.0, %v1997_v31 }
 0x564   :  { %v1999_v3 = vpop.eup %1998 }
 0x565   :  { %v2001_v41 = vpop.eup %2000  ;;  %v1746_v8 = vmul.f32 %v1999_v3, %v1744_v14  ;;  %2002 = vrcp.f32 %v1783_v29  ;;  %vm1751_vm4 = vweird.f32 %v1999_v3  ;;  %v1795_v22 = vand.u32 2147483648, %v1783_v29 }
 0x566   :  { %v1765_v51 = vmul.f32 %v2001_v41, %v1763_v27  ;;  %2004 = vtanh.f32 %v1739_v11  ;;  %vm1770_vm5 = vweird.f32 %v2001_v41  ;;  %vm1752_vm8 = vmor %vm1750_vm6, %vm1751_vm4  ;;  %vm1789_vm13 = vweird.f32 %v1783_v29 }
 0x567   :  { %v1747_v16 = vsub.f32 1.0, %v1746_v8  ;;  %vm1771_vm9 = vmor %vm1769_vm7, %vm1770_vm5  ;;  %v1793_v23 = vand.u32 2147483647, %v1783_v29  ;;  %v1796_v46 = vor.u32 1.1754944e-38, %v1795_v22 }
 0x568   :  { %v1766_v1 = vsub.f32 1.0, %v1765_v51 }
 0x569   :  { %v1748_v54 = vmul.f32 %v1999_v3, %v1747_v16  ;;  %vm1794_vm15 = vcmp.eq.f32.partialorder %v1793_v23, 8.507059e+37 }
 0x56a   :  { %v1767_v59 = vmul.f32 %v2001_v41, %v1766_v1 }
 0x56b   :  { %v2003_v62 = vpop.eup %2002  ;;  %v1749_v63 = vadd.f32 %v1999_v3, %v1748_v54 }
 0x56c   :  { %v1768_v5 = vadd.f32 %v2001_v41, %v1767_v59  ;;  %v1785_v6 = vmul.f32 %v2003_v62, %v1783_v29  ;;  %v2005_v10 = vpop.eup %2004  ;;  %vm1790_vm12 = vweird.f32 %v2003_v62 }
 0x56d   :  { %v1753_v9 = vsel %vm1752_vm8, %v1999_v3, %v1749_v63  ;;  %vm1791_vm14 = vmor %vm1789_vm13, %vm1790_vm12 }
 0x56e   :  { %v1758_v12 = vsel %vm1755_vm10, %v1757_v4, %v1753_v9  ;;  %v1772_v48 = vsel %vm1771_vm9, %v2001_v41, %v1768_v5  ;;  %v1786_v50 = vsub.f32 1.0, %v1785_v6 }
 0x56f   :  { %v1777_v56 = vsel %vm1774_vm11, %v1776_v7, %v1772_v48  ;;  %v1800_v13 = vmul.f32 %v2005_v10, %v1758_v12 }
 0x570   :  { %v1799_v0 = vmul.f32 %v1777_v56, %v3171_v28  ;;  %v1787_v17 = vmul.f32 %v2003_v62, %v1786_v50 }
 0x572   :  { %v1801_v18 = vadd.f32 %v1800_v13, %v1799_v0  ;;  %v1788_v21 = vadd.f32 %v2003_v62, %v1787_v17 }
 0x574   :  { %2006 = vtanh.f32 %v1801_v18  ;;  %v1792_v25 = vsel %vm1791_vm14, %v2003_v62, %v1788_v21 }
 0x575   :  { %v1797_v33 = vsel %vm1794_vm15, %v1796_v46, %v1792_v25 }
 0x57a   :  { %v2007_v28 = vpop.eup %2006 }
 0x57b   :  { %v1803_v34 = vmul.f32 %v2007_v28, %v1797_v33 }
 0x57d   :  { %1805 = vst [vmem:[#allocation9 + $0x38] sm:$0xff] %v1803_v34  ;;  %v1806_v35 = vmax.f32 %v3177_v24, %v1803_v34 }
 0x57e   :  { %1822 = dma.vmem_to_hbm [thread:$0]  %s1815_s1, 1024, %s1817_s26, [#allocation6], %s2119_s2, %s2119_s2, %s2120_s5  }
 0x57f   :  { %1809 = vst [vmem:[#allocation10] sm:$0xff] %v1806_v35 }
 0x580   :  { %1833 = dma.vmem_to_hbm [thread:$0]  %s1829_s28, 128, %s1831_s4, [#allocation11]  }
 0x581   :  { %2108 = dma.done.wait [#allocation6], 1024  }
 0x582   :  { %2109 = vsyncadd [#allocation6], 4294966272 }
 0x583   :  { %2110 = dma.done.wait [#allocation11], 128  }
 0x584   :  { %2111 = vsyncadd [#allocation11], 4294967168 }
 0x585   :  { %1842 = vsyncpa [#allocation5], 1 }
 0x586   :  { %1843 = vsyncpa [#allocation8], 1 }
 0x587   :  { %1844 = vsyncpa [#allocation6], 1 }
 0x588   :  { %1845 = vsyncpa [#allocation11], 1 }

</bundles_post_ra>
